<compile_context>
chip_gen: v7x
topology: tpu7x:2x2x1
jax: 0.10.0
libtpu: 0.0.40
codegen_flags: <defaults>
</compile_context>

<pallas_src>
import functools
import math

import jax
import jax.numpy as jnp
from jax import lax
from jax.experimental import pallas as pl
from jax.experimental.pallas import tpu as pltpu

_BN_EPS = 1e-5
_LANES = 128


def _round_up(x, m):
    return ((x + m - 1) // m) * m


def _layer_geometry(L, K):
    P = K // 2                       # pool kernel == pool stride (PyTorch MaxPool1d default)
    Lc = L - K + 1                   # conv output length (stride 1, VALID)
    assert P >= 1 and Lc >= P, "sequence too short for this layer"
    Lp = (Lc - P) // P + 1           # pool output length
    Lcp = Lp * P                     # conv rows actually consumed by the pool
    return P, Lp, Lcp


def _batch_block(B):
    for cand in range(min(8, B), 0, -1):
        if B % cand == 0:
            return cand
    return 1


def _make_conv_pool_kernel(pre_bn, K, P, Lp, Lcp, Bb, Cpad):
    """Fused [prev-layer BN+ReLU] -> im2col conv1d -> maxpool(+bias) -> packed BN stats."""

    def kernel(*refs):
        if pre_bn:
            (x_ref, psc_ref, psh_ref, w_ref, b_ref, y_ref, st_ref, acc_ref) = refs
        else:
            (x_ref, w_ref, b_ref, y_ref, st_ref, acc_ref) = refs
            psc_ref = psh_ref = None

        csum = jnp.zeros((1, Cpad), jnp.float32)
        csq = jnp.zeros((1, Cpad), jnp.float32)
        for bb in range(Bb):                                   # static unroll over batch block
            x = x_ref[bb]                                      # (L, Cpad) f32
            if pre_bn:
                # previous layer's BatchNorm (precomputed scale/shift) + ReLU, fused here
                x = jnp.maximum(x * psc_ref[...] + psh_ref[...], 0.0)
            x = x.astype(w_ref.dtype)                          # bf16 MXU operands on v6e/v7x

            # im2col: one fat matmul, contraction dim = K*Cpad (instead of K thin dots)
            xw = jnp.concatenate([x[k:k + Lcp, :] for k in range(K)], axis=-1)
            acc_b = acc_ref.at[bb]                             # (Lcp, Cpad) f32 scratch view
            acc_b[...] = jnp.dot(xw, w_ref[...], preferred_element_type=jnp.float32)

            # max-pool: stride == kernel => disjoint windows => P sublane-strided reads
            pooled = acc_b[pl.ds(0, Lp, stride=P), :]
            for d in range(1, P):
                pooled = jnp.maximum(pooled, acc_b[pl.ds(d, Lp, stride=P), :])
            pooled = pooled + b_ref[...]      # conv bias commutes with max (monotone)
            y_ref[bb] = pooled                                 # (Lp, Cpad), lane-dense store

            csum = csum + jnp.sum(pooled, axis=0, keepdims=True)
            csq = csq + jnp.sum(pooled * pooled, axis=0, keepdims=True)

        # packed per-block BatchNorm statistics: row 0 = sum, row 1 = sum of squares
        st_ref[0] = jnp.concatenate(
            [csum, csq, jnp.zeros((6, Cpad), jnp.float32)], axis=0)

    return kernel


def _compiler_params(block_bytes):
    # double-buffered blocks + scratch + headroom, capped at the v7x scoped-VMEM default.
    need = 3 * block_bytes + (4 << 20)
    limit = int(min(max(need, 16 << 20), 32 << 20))
    return pltpu.CompilerParams(dimension_semantics=("parallel",),
                                vmem_limit_bytes=limit)


def _conv_pool_layer(h, layer, pre_scale, pre_shift):
    """h: (B, L, Cpad) f32 -> (pooled (B, Lp, Cpad) f32, stats (B//Bb, 8, Cpad) f32)."""
    B, L, Cpad = h.shape
    K = layer["K"]
    P, Lp, Lcp = _layer_geometry(L, K)
    Bb = _batch_block(B)
    nblk = B // Bb

    pre_bn = pre_scale is not None
    inputs = [h]
    in_specs = [pl.BlockSpec((Bb, L, Cpad), lambda b: (b, 0, 0))]
    if pre_bn:
        inputs += [pre_scale, pre_shift]
        in_specs += [pl.BlockSpec((1, Cpad), lambda b: (0, 0)),
                     pl.BlockSpec((1, Cpad), lambda b: (0, 0))]
    inputs += [layer["weight"], layer["bias"]]
    in_specs += [pl.BlockSpec((K * Cpad, Cpad), lambda b: (0, 0)),
                 pl.BlockSpec((1, Cpad), lambda b: (0, 0))]

    out_shape = (jax.ShapeDtypeStruct((B, Lp, Cpad), jnp.float32),
                 jax.ShapeDtypeStruct((nblk, 8, Cpad), jnp.float32))
    out_specs = (pl.BlockSpec((Bb, Lp, Cpad), lambda b: (b, 0, 0)),
                 pl.BlockSpec((1, 8, Cpad), lambda b: (b, 0, 0)))

    w_item = layer["weight"].dtype.itemsize
    block_bytes = (4 * Bb * L * Cpad + 2 * 4 * Cpad
                   + int(layer["weight"].size) * w_item + 4 * Cpad
                   + 4 * Bb * Lp * Cpad + 4 * 8 * Cpad
                   + 4 * Bb * Lcp * Cpad            # f32 conv-accumulator scratch
                   + Lcp * K * Cpad * w_item)       # im2col temporary

    kernel = _make_conv_pool_kernel(pre_bn, K, P, Lp, Lcp, Bb, Cpad)
    return pl.pallas_call(
        kernel,
        grid=(nblk,),
        in_specs=in_specs,
        out_specs=out_specs,
        out_shape=out_shape,
        scratch_shapes=[pltpu.VMEM((Bb, Lcp, Cpad), jnp.float32)],
        compiler_params=_compiler_params(block_bytes),
    )(*inputs)


def _bn_scale_shift(stats, gamma, beta, n):
    """Tiny (Cpad-sized) XLA glue: packed per-block stats -> BN affine scale/shift."""
    sums = jnp.sum(stats[:, 0, :], axis=0, keepdims=True)       # (1, Cpad)
    sumsq = jnp.sum(stats[:, 1, :], axis=0, keepdims=True)
    mean = sums / n
    # single-pass biased batch variance in f32 (clamp guards cancellation); padded
    # channels have gamma=0 so they normalize to exactly 0.
    var = jnp.maximum(sumsq / n - mean * mean, 0.0)
    scale = gamma * lax.rsqrt(var + _BN_EPS)
    shift = beta - mean * scale
    return scale, shift


def temporal_replay_convolution(x, params):
    """x: (B, T, C_in) — PyTorch forward input layout. params from prepare_params()."""
    B, T, Cin = x.shape
    cpad = params[0]["cpad"]
    # lane-pad the input channels once; padded weight rows are zero => exact no-op channels
    h = jnp.pad(x.astype(jnp.float32), ((0, 0), (0, 0), (0, cpad - Cin)))
    scale = shift = None
    for layer in params:
        h, stats = _conv_pool_layer(h, layer, scale, shift)
        scale, shift = _bn_scale_shift(stats, layer["gamma"], layer["beta"],
                                       float(h.shape[0] * h.shape[1]))
    # final BN + ReLU: trivial elementwise math left to XLA (fuses for free), then drop
    # the lane-padding channels.
    out = jnp.maximum(h * scale + shift, 0.0)
    return out[:, :, :params[-1]["cout"]]


# ------------------------- one-time parameter preparation -------------------------

def prepare_params(raw_params, matmul_dtype=jnp.bfloat16):
    """Convert PyTorch-layout params to kernel-ready, lane-padded im2col form ONCE."""
    widths = [1]
    for p in raw_params:
        cout, cin, _ = p["weight"].shape
        widths += [int(cin), int(cout)]
    cpad = _round_up(max(widths), _LANES)

    prepared = []
    for p in raw_params:
        W = jnp.asarray(p["weight"], jnp.float32)               # (Cout, Cin, K) PyTorch layout
        Cout, Cin, K = W.shape
        # im2col weight: row index = k*cpad + cin, column = cout (zero-padded channels)
        Wk = jnp.zeros((K, cpad, cpad), jnp.float32)
        Wk = Wk.at[:, :Cin, :Cout].set(jnp.transpose(W, (2, 1, 0)))
        prepared.append(dict(
            K=int(K), cout=int(Cout), cpad=int(cpad),
            weight=Wk.reshape(K * cpad, cpad).astype(matmul_dtype),
            bias=jnp.zeros((1, cpad), jnp.float32).at[0, :Cout].set(
                jnp.asarray(p["bias"], jnp.float32)),
            gamma=jnp.zeros((1, cpad), jnp.float32).at[0, :Cout].set(
                jnp.asarray(p["gamma"], jnp.float32)),
            beta=jnp.zeros((1, cpad), jnp.float32).at[0, :Cout].set(
                jnp.asarray(p["beta"], jnp.float32)),
        ))
    return prepared


# ------------------------- pure-JAX reference -------------------------

def reference_forward(x, raw_params):
    h = jnp.transpose(x, (0, 2, 1))                             # (B, C, T)
    for p in raw_params:
        W, b, g, bt, K = p["weight"], p["bias"], p["gamma"], p["beta"], p["K"]
        h = lax.conv_general_dilated(h, W, window_strides=(1,), padding="VALID",
                                     dimension_numbers=("NCH", "OIH", "NCH"))
        h = h + b[None, :, None]
        P = K // 2
        h = lax.reduce_window(h, -jnp.inf, lax.max, (1, 1, P), (1, 1, P), "VALID")
        mean = jnp.mean(h, axis=(0, 2), keepdims=True)
        var = jnp.mean((h - mean) ** 2, axis=(0, 2), keepdims=True)
        h = g[None, :, None] * (h - mean) / jnp.sqrt(var + _BN_EPS) + bt[None, :, None]
        h = jnp.maximum(h, 0.0)
    return jnp.transpose(h, (0, 2, 1))


# ------------------------- parameter init (PyTorch defaults) -------------------------

def init_params(key, channel_counts, kernel_size=7):
    params = []
    for cin, cout in zip(channel_counts[:-1], channel_counts[1:]):
        key, kw, kb = jax.random.split(key, 3)
        bound = 1.0 / math.sqrt(cin * kernel_size)              # PyTorch Conv1d default init
        weight = jax.random.uniform(kw, (cout, cin, kernel_size),
                                    minval=-bound, maxval=bound, dtype=jnp.float32)
        bias = jax.random.uniform(kb, (cout,), minval=-bound, maxval=bound,
                                  dtype=jnp.float32)
        params.append(dict(weight=weight, bias=bias,
                           gamma=jnp.ones((cout,), jnp.float32),   # BN default init
                           beta=jnp.zeros((cout,), jnp.float32),
                           K=kernel_size))
    return params


if __name__ == "__main__":
    B, T = 2, 64
    channel_counts = (4, 8, 16)
    kernel_size = 7

    key = jax.random.PRNGKey(0)
    kx, kp = jax.random.split(key)
    x = jax.random.normal(kx, (B, T, channel_counts[0]), dtype=jnp.float32)
    raw_params = init_params(kp, channel_counts, kernel_size)

    ref = jax.block_until_ready(reference_forward(x, raw_params))

    # exactness check: f32 MXU-operand path
    params_f32 = prepare_params(raw_params, matmul_dtype=jnp.float32)
    out_f32 = jax.block_until_ready(
        jax.jit(functools.partial(temporal_replay_convolution, params=params_f32))(x))
    assert out_f32.shape == ref.shape, (out_f32.shape, ref.shape)
    err_f32 = float(jnp.max(jnp.abs(out_f32 - ref)))
    assert err_f32 < 1e-4, err_f32

    # performance path: bf16 MXU operands (native on v6e/v7x); all BN math stays f32.
    # Tolerance reflects bf16 operand rounding only (structure verified exactly above).
    params_bf16 = prepare_params(raw_params, matmul_dtype=jnp.bfloat16)
    out_bf16 = jax.block_until_ready(
        jax.jit(functools.partial(temporal_replay_convolution, params=params_bf16))(x))
    assert out_bf16.shape == ref.shape, (out_bf16.shape, ref.shape)
    err_bf16 = float(jnp.max(jnp.abs(out_bf16 - ref)))
    assert err_bf16 < 1e-1, err_bf16

    print("KERNEL_OK")
</pallas_src>

<mosaic_0001>
module attributes {stable_mosaic.version = 11 : i64} {
  func.func @kernel(%arg0: i32, %arg1: memref<2x64x128xf32, #tpu.memory_space<vmem>>, %arg2: memref<896x128xf32, #tpu.memory_space<vmem>>, %arg3: memref<1x128xf32, #tpu.memory_space<vmem>>, %arg4: memref<2x19x128xf32, #tpu.memory_space<vmem>>, %arg5: memref<1x8x128xf32, #tpu.memory_space<vmem>>, %arg6: memref<2x57x128xf32, #tpu.memory_space<vmem>>) attributes {dimension_semantics = [#tpu.dimension_semantics<parallel>], iteration_bounds = array<i64: 1>, scalar_prefetch = 0 : i64, scratch_operands = 1 : i64, tpu.core_type = #tpu.core_type<tc>, window_params = [{transform_indices = @transform_0, window_bounds = array<i64: 2, 64, 128>}, {pipeline_mode = #tpu.pipeline_mode<synchronous>, transform_indices = @transform_1, window_bounds = array<i64: 896, 128>}, {pipeline_mode = #tpu.pipeline_mode<synchronous>, transform_indices = @transform_2, window_bounds = array<i64: 1, 128>}, {transform_indices = @transform_3, window_bounds = array<i64: 2, 19, 128>}, {transform_indices = @transform_4, window_bounds = array<i64: 1, 8, 128>}]} {
    %cst = arith.constant 0.000000e+00 : f32
    %0 = vector.broadcast %cst : f32 to vector<1x128xf32>
    %cst_0 = arith.constant 0.000000e+00 : f32
    %1 = vector.broadcast %cst_0 : f32 to vector<1x128xf32>
    %c0 = arith.constant 0 : index
    %c0_1 = arith.constant 0 : index
    %c0_2 = arith.constant 0 : index
    %2 = vector.load %arg1[%c0, %c0_1, %c0_2] : memref<2x64x128xf32, #tpu.memory_space<vmem>>, vector<1x64x128xf32>
    %3 = vector.shape_cast %2 : vector<1x64x128xf32> to vector<64x128xf32>
    %4 = vector.extract_strided_slice %3 {offsets = [0, 0], sizes = [57, 128], strides = [1, 1]} : vector<64x128xf32> to vector<57x128xf32>
    %5 = vector.extract_strided_slice %3 {offsets = [1, 0], sizes = [57, 128], strides = [1, 1]} : vector<64x128xf32> to vector<57x128xf32>
    %6 = vector.extract_strided_slice %3 {offsets = [2, 0], sizes = [57, 128], strides = [1, 1]} : vector<64x128xf32> to vector<57x128xf32>
    %7 = vector.extract_strided_slice %3 {offsets = [3, 0], sizes = [57, 128], strides = [1, 1]} : vector<64x128xf32> to vector<57x128xf32>
    %8 = vector.extract_strided_slice %3 {offsets = [4, 0], sizes = [57, 128], strides = [1, 1]} : vector<64x128xf32> to vector<57x128xf32>
    %9 = vector.extract_strided_slice %3 {offsets = [5, 0], sizes = [57, 128], strides = [1, 1]} : vector<64x128xf32> to vector<57x128xf32>
    %10 = vector.extract_strided_slice %3 {offsets = [6, 0], sizes = [57, 128], strides = [1, 1]} : vector<64x128xf32> to vector<57x128xf32>
    %11 = tpu.concatenate %4, %5, %6, %7, %8, %9, %10 in 1 : vector<57x128xf32>, vector<57x128xf32>, vector<57x128xf32>, vector<57x128xf32>, vector<57x128xf32>, vector<57x128xf32>, vector<57x128xf32> -> vector<57x896xf32>
    %c0_3 = arith.constant 0 : index
    %c0_4 = arith.constant 0 : index
    %12 = vector.load %arg2[%c0_3, %c0_4] : memref<896x128xf32, #tpu.memory_space<vmem>>, vector<896x128xf32>
    %cst_5 = arith.constant dense<0.000000e+00> : vector<57x128xf32>
    %13 = tpu.matmul %11, %12, %cst_5 {dimension_numbers = #tpu.dot_dimension_numbers<[1], [0], [0], [1], [0, 0, 1, 1], [], []>} : vector<57x896xf32>, vector<896x128xf32>, vector<57x128xf32> -> vector<57x128xf32>
    %c0_6 = arith.constant 0 : index
    %c0_7 = arith.constant 0 : index
    %c0_8 = arith.constant 0 : index
    %14 = vector.load %arg6[%c0_6, %c0_7, %c0_8] : memref<2x57x128xf32, #tpu.memory_space<vmem>>, vector<1x57x128xf32>
    %15 = vector.shape_cast %14 : vector<1x57x128xf32> to vector<57x128xf32>
    %16 = vector.shape_cast %13 : vector<57x128xf32> to vector<1x57x128xf32>
    tpu.vector_store %arg6[%c0_6, %c0_7, %c0_8], %16 {strides = array<i32>} : memref<2x57x128xf32, #tpu.memory_space<vmem>>, vector<1x57x128xf32>,
    %c0_i32 = arith.constant 0 : i32
    %c0_i32_9 = arith.constant 0 : i32
    %c0_i32_10 = arith.constant 0 : i32
    %17 = tpu.memref_slice %arg6[%c0_i32, %c0_i32_9, %c0_i32_10] : memref<2x57x128xf32, #tpu.memory_space<vmem>> -> memref<1x57x128xf32, #tpu.memory_space<vmem>>
    %18 = tpu.memref_squeeze %17 : memref<1x57x128xf32, #tpu.memory_space<vmem>> -> memref<57x128xf32, #tpu.memory_space<vmem>>
    %c0_11 = arith.constant 0 : index
    %c0_12 = arith.constant 0 : index
    %19 = tpu.strided_load %18[%c0_11, %c0_12] {strides = array<i32: 3, 1>} : memref<57x128xf32, #tpu.memory_space<vmem>>, vector<19x128xf32>
    %c0_i32_13 = arith.constant 0 : i32
    %c0_i32_14 = arith.constant 0 : i32
    %c0_i32_15 = arith.constant 0 : i32
    %20 = tpu.memref_slice %arg6[%c0_i32_13, %c0_i32_14, %c0_i32_15] : memref<2x57x128xf32, #tpu.memory_space<vmem>> -> memref<1x57x128xf32, #tpu.memory_space<vmem>>
    %21 = tpu.memref_squeeze %20 : memref<1x57x128xf32, #tpu.memory_space<vmem>> -> memref<57x128xf32, #tpu.memory_space<vmem>>
    %c1 = arith.constant 1 : index
    %c0_16 = arith.constant 0 : index
    %22 = tpu.strided_load %21[%c1, %c0_16] {strides = array<i32: 3, 1>} : memref<57x128xf32, #tpu.memory_space<vmem>>, vector<19x128xf32>
    %23 = arith.maximumf %19, %22 : vector<19x128xf32>
    %c0_i32_17 = arith.constant 0 : i32
    %c0_i32_18 = arith.constant 0 : i32
    %c0_i32_19 = arith.constant 0 : i32
    %24 = tpu.memref_slice %arg6[%c0_i32_17, %c0_i32_18, %c0_i32_19] : memref<2x57x128xf32, #tpu.memory_space<vmem>> -> memref<1x57x128xf32, #tpu.memory_space<vmem>>
    %25 = tpu.memref_squeeze %24 : memref<1x57x128xf32, #tpu.memory_space<vmem>> -> memref<57x128xf32, #tpu.memory_space<vmem>>
    %c2 = arith.constant 2 : index
    %c0_20 = arith.constant 0 : index
    %26 = tpu.strided_load %25[%c2, %c0_20] {strides = array<i32: 3, 1>} : memref<57x128xf32, #tpu.memory_space<vmem>>, vector<19x128xf32>
    %27 = arith.maximumf %23, %26 : vector<19x128xf32>
    %c0_21 = arith.constant 0 : index
    %c0_22 = arith.constant 0 : index
    %28 = vector.load %arg3[%c0_21, %c0_22] : memref<1x128xf32, #tpu.memory_space<vmem>>, vector<1x128xf32>
    %29 = vector.broadcast %28 : vector<1x128xf32> to vector<19x128xf32>
    %30 = arith.addf %27, %29 : vector<19x128xf32>
    %c0_23 = arith.constant 0 : index
    %c0_24 = arith.constant 0 : index
    %c0_25 = arith.constant 0 : index
    %31 = vector.load %arg4[%c0_23, %c0_24, %c0_25] : memref<2x19x128xf32, #tpu.memory_space<vmem>>, vector<1x19x128xf32>
    %32 = vector.shape_cast %31 : vector<1x19x128xf32> to vector<19x128xf32>
    %33 = vector.shape_cast %30 : vector<19x128xf32> to vector<1x19x128xf32>
    tpu.vector_store %arg4[%c0_23, %c0_24, %c0_25], %33 {strides = array<i32>} : memref<2x19x128xf32, #tpu.memory_space<vmem>>, vector<1x19x128xf32>,
    %cst_26 = arith.constant dense<0.000000e+00> : vector<128xf32>
    %34 = vector.multi_reduction <add>, %30, %cst_26 [0] : vector<19x128xf32> to vector<128xf32>
    %35 = vector.shape_cast %34 : vector<128xf32> to vector<1x128xf32>
    %36 = arith.addf %0, %35 : vector<1x128xf32>
    %37 = arith.mulf %30, %30 : vector<19x128xf32>
    %cst_27 = arith.constant dense<0.000000e+00> : vector<128xf32>
    %38 = vector.multi_reduction <add>, %37, %cst_27 [0] : vector<19x128xf32> to vector<128xf32>
    %39 = vector.shape_cast %38 : vector<128xf32> to vector<1x128xf32>
    %40 = arith.addf %1, %39 : vector<1x128xf32>
    %c1_28 = arith.constant 1 : index
    %c0_29 = arith.constant 0 : index
    %c0_30 = arith.constant 0 : index
    %41 = vector.load %arg1[%c1_28, %c0_29, %c0_30] : memref<2x64x128xf32, #tpu.memory_space<vmem>>, vector<1x64x128xf32>
    %42 = vector.shape_cast %41 : vector<1x64x128xf32> to vector<64x128xf32>
    %43 = vector.extract_strided_slice %42 {offsets = [0, 0], sizes = [57, 128], strides = [1, 1]} : vector<64x128xf32> to vector<57x128xf32>
    %44 = vector.extract_strided_slice %42 {offsets = [1, 0], sizes = [57, 128], strides = [1, 1]} : vector<64x128xf32> to vector<57x128xf32>
    %45 = vector.extract_strided_slice %42 {offsets = [2, 0], sizes = [57, 128], strides = [1, 1]} : vector<64x128xf32> to vector<57x128xf32>
    %46 = vector.extract_strided_slice %42 {offsets = [3, 0], sizes = [57, 128], strides = [1, 1]} : vector<64x128xf32> to vector<57x128xf32>
    %47 = vector.extract_strided_slice %42 {offsets = [4, 0], sizes = [57, 128], strides = [1, 1]} : vector<64x128xf32> to vector<57x128xf32>
    %48 = vector.extract_strided_slice %42 {offsets = [5, 0], sizes = [57, 128], strides = [1, 1]} : vector<64x128xf32> to vector<57x128xf32>
    %49 = vector.extract_strided_slice %42 {offsets = [6, 0], sizes = [57, 128], strides = [1, 1]} : vector<64x128xf32> to vector<57x128xf32>
    %50 = tpu.concatenate %43, %44, %45, %46, %47, %48, %49 in 1 : vector<57x128xf32>, vector<57x128xf32>, vector<57x128xf32>, vector<57x128xf32>, vector<57x128xf32>, vector<57x128xf32>, vector<57x128xf32> -> vector<57x896xf32>
    %c0_31 = arith.constant 0 : index
    %c0_32 = arith.constant 0 : index
    %51 = vector.load %arg2[%c0_31, %c0_32] : memref<896x128xf32, #tpu.memory_space<vmem>>, vector<896x128xf32>
    %cst_33 = arith.constant dense<0.000000e+00> : vector<57x128xf32>
    %52 = tpu.matmul %50, %51, %cst_33 {dimension_numbers = #tpu.dot_dimension_numbers<[1], [0], [0], [1], [0, 0, 1, 1], [], []>} : vector<57x896xf32>, vector<896x128xf32>, vector<57x128xf32> -> vector<57x128xf32>
    %c1_34 = arith.constant 1 : index
    %c0_35 = arith.constant 0 : index
    %c0_36 = arith.constant 0 : index
    %53 = vector.load %arg6[%c1_34, %c0_35, %c0_36] : memref<2x57x128xf32, #tpu.memory_space<vmem>>, vector<1x57x128xf32>
    %54 = vector.shape_cast %53 : vector<1x57x128xf32> to vector<57x128xf32>
    %55 = vector.shape_cast %52 : vector<57x128xf32> to vector<1x57x128xf32>
    tpu.vector_store %arg6[%c1_34, %c0_35, %c0_36], %55 {strides = array<i32>} : memref<2x57x128xf32, #tpu.memory_space<vmem>>, vector<1x57x128xf32>,
    %c1_i32 = arith.constant 1 : i32
    %c0_i32_37 = arith.constant 0 : i32
    %c0_i32_38 = arith.constant 0 : i32
    %56 = tpu.memref_slice %arg6[%c1_i32, %c0_i32_37, %c0_i32_38] : memref<2x57x128xf32, #tpu.memory_space<vmem>> -> memref<1x57x128xf32, #tpu.memory_space<vmem>>
    %57 = tpu.memref_squeeze %56 : memref<1x57x128xf32, #tpu.memory_space<vmem>> -> memref<57x128xf32, #tpu.memory_space<vmem>>
    %c0_39 = arith.constant 0 : index
    %c0_40 = arith.constant 0 : index
    %58 = tpu.strided_load %57[%c0_39, %c0_40] {strides = array<i32: 3, 1>} : memref<57x128xf32, #tpu.memory_space<vmem>>, vector<19x128xf32>
    %c1_i32_41 = arith.constant 1 : i32
    %c0_i32_42 = arith.constant 0 : i32
    %c0_i32_43 = arith.constant 0 : i32
    %59 = tpu.memref_slice %arg6[%c1_i32_41, %c0_i32_42, %c0_i32_43] : memref<2x57x128xf32, #tpu.memory_space<vmem>> -> memref<1x57x128xf32, #tpu.memory_space<vmem>>
    %60 = tpu.memref_squeeze %59 : memref<1x57x128xf32, #tpu.memory_space<vmem>> -> memref<57x128xf32, #tpu.memory_space<vmem>>
    %c1_44 = arith.constant 1 : index
    %c0_45 = arith.constant 0 : index
    %61 = tpu.strided_load %60[%c1_44, %c0_45] {strides = array<i32: 3, 1>} : memref<57x128xf32, #tpu.memory_space<vmem>>, vector<19x128xf32>
    %62 = arith.maximumf %58, %61 : vector<19x128xf32>
    %c1_i32_46 = arith.constant 1 : i32
    %c0_i32_47 = arith.constant 0 : i32
    %c0_i32_48 = arith.constant 0 : i32
    %63 = tpu.memref_slice %arg6[%c1_i32_46, %c0_i32_47, %c0_i32_48] : memref<2x57x128xf32, #tpu.memory_space<vmem>> -> memref<1x57x128xf32, #tpu.memory_space<vmem>>
    %64 = tpu.memref_squeeze %63 : memref<1x57x128xf32, #tpu.memory_space<vmem>> -> memref<57x128xf32, #tpu.memory_space<vmem>>
    %c2_49 = arith.constant 2 : index
    %c0_50 = arith.constant 0 : index
    %65 = tpu.strided_load %64[%c2_49, %c0_50] {strides = array<i32: 3, 1>} : memref<57x128xf32, #tpu.memory_space<vmem>>, vector<19x128xf32>
    %66 = arith.maximumf %62, %65 : vector<19x128xf32>
    %c0_51 = arith.constant 0 : index
    %c0_52 = arith.constant 0 : index
    %67 = vector.load %arg3[%c0_51, %c0_52] : memref<1x128xf32, #tpu.memory_space<vmem>>, vector<1x128xf32>
    %68 = vector.broadcast %67 : vector<1x128xf32> to vector<19x128xf32>
    %69 = arith.addf %66, %68 : vector<19x128xf32>
    %c1_53 = arith.constant 1 : index
    %c0_54 = arith.constant 0 : index
    %c0_55 = arith.constant 0 : index
    %70 = vector.load %arg4[%c1_53, %c0_54, %c0_55] : memref<2x19x128xf32, #tpu.memory_space<vmem>>, vector<1x19x128xf32>
    %71 = vector.shape_cast %70 : vector<1x19x128xf32> to vector<19x128xf32>
    %72 = vector.shape_cast %69 : vector<19x128xf32> to vector<1x19x128xf32>
    tpu.vector_store %arg4[%c1_53, %c0_54, %c0_55], %72 {strides = array<i32>} : memref<2x19x128xf32, #tpu.memory_space<vmem>>, vector<1x19x128xf32>,
    %cst_56 = arith.constant dense<0.000000e+00> : vector<128xf32>
    %73 = vector.multi_reduction <add>, %69, %cst_56 [0] : vector<19x128xf32> to vector<128xf32>
    %74 = vector.shape_cast %73 : vector<128xf32> to vector<1x128xf32>
    %75 = arith.addf %36, %74 : vector<1x128xf32>
    %76 = arith.mulf %69, %69 : vector<19x128xf32>
    %cst_57 = arith.constant dense<0.000000e+00> : vector<128xf32>
    %77 = vector.multi_reduction <add>, %76, %cst_57 [0] : vector<19x128xf32> to vector<128xf32>
    %78 = vector.shape_cast %77 : vector<128xf32> to vector<1x128xf32>
    %79 = arith.addf %40, %78 : vector<1x128xf32>
    %cst_58 = arith.constant 0.000000e+00 : f32
    %80 = vector.broadcast %cst_58 : f32 to vector<6x128xf32>
    %81 = tpu.concatenate %75, %79, %80 in 0 : vector<1x128xf32>, vector<1x128xf32>, vector<6x128xf32> -> vector<8x128xf32>
    %c0_59 = arith.constant 0 : index
    %c0_60 = arith.constant 0 : index
    %c0_61 = arith.constant 0 : index
    %82 = vector.load %arg5[%c0_59, %c0_60, %c0_61] : memref<1x8x128xf32, #tpu.memory_space<vmem>>, vector<1x8x128xf32>
    %83 = vector.shape_cast %82 : vector<1x8x128xf32> to vector<8x128xf32>
    %84 = vector.shape_cast %81 : vector<8x128xf32> to vector<1x8x128xf32>
    tpu.vector_store %arg5[%c0_59, %c0_60, %c0_61], %84 {strides = array<i32>} : memref<1x8x128xf32, #tpu.memory_space<vmem>>, vector<1x8x128xf32>,
    return
  }
  func.func @transform_0(%arg0: i32) -> (i32, i32, i32) {
    %c0_i32 = arith.constant 0 : i32
    %c0_i32_0 = arith.constant 0 : i32
    %c0_i32_1 = arith.constant 0 : i32
    return %arg0, %c0_i32, %c0_i32_0 : i32, i32, i32
  }
  func.func @transform_1(%arg0: i32) -> (i32, i32) {
    %c0_i32 = arith.constant 0 : i32
    %c0_i32_0 = arith.constant 0 : i32
    %c0_i32_1 = arith.constant 0 : i32
    return %c0_i32, %c0_i32_0 : i32, i32
  }
  func.func @transform_2(%arg0: i32) -> (i32, i32) {
    %c0_i32 = arith.constant 0 : i32
    %c0_i32_0 = arith.constant 0 : i32
    %c0_i32_1 = arith.constant 0 : i32
    return %c0_i32, %c0_i32_0 : i32, i32
  }
  func.func @transform_3(%arg0: i32) -> (i32, i32, i32) {
    %c0_i32 = arith.constant 0 : i32
    %c0_i32_0 = arith.constant 0 : i32
    %c0_i32_1 = arith.constant 0 : i32
    return %arg0, %c0_i32, %c0_i32_0 : i32, i32, i32
  }
  func.func @transform_4(%arg0: i32) -> (i32, i32, i32) {
    %c0_i32 = arith.constant 0 : i32
    %c0_i32_0 = arith.constant 0 : i32
    %c0_i32_1 = arith.constant 0 : i32
    return %arg0, %c0_i32, %c0_i32_0 : i32, i32, i32
  }
}

module attributes {stable_mosaic.version = 11 : i64} {
  func.func @kernel(%arg0: i32, %arg1: memref<2x19x128xf32, #tpu.memory_space<vmem>>, %arg2: memref<1x128xf32, #tpu.memory_space<vmem>>, %arg3: memref<1x128xf32, #tpu.memory_space<vmem>>, %arg4: memref<896x128xf32, #tpu.memory_space<vmem>>, %arg5: memref<1x128xf32, #tpu.memory_space<vmem>>, %arg6: memref<2x4x128xf32, #tpu.memory_space<vmem>>, %arg7: memref<1x8x128xf32, #tpu.memory_space<vmem>>, %arg8: memref<2x12x128xf32, #tpu.memory_space<vmem>>) attributes {dimension_semantics = [#tpu.dimension_semantics<parallel>], iteration_bounds = array<i64: 1>, scalar_prefetch = 0 : i64, scratch_operands = 1 : i64, tpu.core_type = #tpu.core_type<tc>, window_params = [{transform_indices = @transform_0, window_bounds = array<i64: 2, 19, 128>}, {pipeline_mode = #tpu.pipeline_mode<synchronous>, transform_indices = @transform_1, window_bounds = array<i64: 1, 128>}, {pipeline_mode = #tpu.pipeline_mode<synchronous>, transform_indices = @transform_2, window_bounds = array<i64: 1, 128>}, {pipeline_mode = #tpu.pipeline_mode<synchronous>, transform_indices = @transform_3, window_bounds = array<i64: 896, 128>}, {pipeline_mode = #tpu.pipeline_mode<synchronous>, transform_indices = @transform_4, window_bounds = array<i64: 1, 128>}, {transform_indices = @transform_5, window_bounds = array<i64: 2, 4, 128>}, {transform_indices = @transform_6, window_bounds = array<i64: 1, 8, 128>}]} {
    %cst = arith.constant 0.000000e+00 : f32
    %0 = vector.broadcast %cst : f32 to vector<1x128xf32>
    %cst_0 = arith.constant 0.000000e+00 : f32
    %1 = vector.broadcast %cst_0 : f32 to vector<1x128xf32>
    %c0 = arith.constant 0 : index
    %c0_1 = arith.constant 0 : index
    %c0_2 = arith.constant 0 : index
    %2 = vector.load %arg1[%c0, %c0_1, %c0_2] : memref<2x19x128xf32, #tpu.memory_space<vmem>>, vector<1x19x128xf32>
    %3 = vector.shape_cast %2 : vector<1x19x128xf32> to vector<19x128xf32>
    %c0_3 = arith.constant 0 : index
    %c0_4 = arith.constant 0 : index
    %4 = vector.load %arg2[%c0_3, %c0_4] : memref<1x128xf32, #tpu.memory_space<vmem>>, vector<1x128xf32>
    %5 = vector.broadcast %4 : vector<1x128xf32> to vector<19x128xf32>
    %6 = arith.mulf %3, %5 : vector<19x128xf32>
    %c0_5 = arith.constant 0 : index
    %c0_6 = arith.constant 0 : index
    %7 = vector.load %arg3[%c0_5, %c0_6] : memref<1x128xf32, #tpu.memory_space<vmem>>, vector<1x128xf32>
    %8 = vector.broadcast %7 : vector<1x128xf32> to vector<19x128xf32>
    %9 = arith.addf %6, %8 : vector<19x128xf32>
    %cst_7 = arith.constant 0.000000e+00 : f32
    %10 = vector.broadcast %cst_7 : f32 to vector<19x128xf32>
    %11 = arith.maximumf %9, %10 : vector<19x128xf32>
    %12 = vector.extract_strided_slice %11 {offsets = [0, 0], sizes = [12, 128], strides = [1, 1]} : vector<19x128xf32> to vector<12x128xf32>
    %13 = vector.extract_strided_slice %11 {offsets = [1, 0], sizes = [12, 128], strides = [1, 1]} : vector<19x128xf32> to vector<12x128xf32>
    %14 = vector.extract_strided_slice %11 {offsets = [2, 0], sizes = [12, 128], strides = [1, 1]} : vector<19x128xf32> to vector<12x128xf32>
    %15 = vector.extract_strided_slice %11 {offsets = [3, 0], sizes = [12, 128], strides = [1, 1]} : vector<19x128xf32> to vector<12x128xf32>
    %16 = vector.extract_strided_slice %11 {offsets = [4, 0], sizes = [12, 128], strides = [1, 1]} : vector<19x128xf32> to vector<12x128xf32>
    %17 = vector.extract_strided_slice %11 {offsets = [5, 0], sizes = [12, 128], strides = [1, 1]} : vector<19x128xf32> to vector<12x128xf32>
    %18 = vector.extract_strided_slice %11 {offsets = [6, 0], sizes = [12, 128], strides = [1, 1]} : vector<19x128xf32> to vector<12x128xf32>
    %19 = tpu.concatenate %12, %13, %14, %15, %16, %17, %18 in 1 : vector<12x128xf32>, vector<12x128xf32>, vector<12x128xf32>, vector<12x128xf32>, vector<12x128xf32>, vector<12x128xf32>, vector<12x128xf32> -> vector<12x896xf32>
    %c0_8 = arith.constant 0 : index
    %c0_9 = arith.constant 0 : index
    %20 = vector.load %arg4[%c0_8, %c0_9] : memref<896x128xf32, #tpu.memory_space<vmem>>, vector<896x128xf32>
    %cst_10 = arith.constant dense<0.000000e+00> : vector<12x128xf32>
    %21 = tpu.matmul %19, %20, %cst_10 {dimension_numbers = #tpu.dot_dimension_numbers<[1], [0], [0], [1], [0, 0, 1, 1], [], []>} : vector<12x896xf32>, vector<896x128xf32>, vector<12x128xf32> -> vector<12x128xf32>
    %c0_11 = arith.constant 0 : index
    %c0_12 = arith.constant 0 : index
    %c0_13 = arith.constant 0 : index
    %22 = vector.load %arg8[%c0_11, %c0_12, %c0_13] : memref<2x12x128xf32, #tpu.memory_space<vmem>>, vector<1x12x128xf32>
    %23 = vector.shape_cast %22 : vector<1x12x128xf32> to vector<12x128xf32>
    %24 = vector.shape_cast %21 : vector<12x128xf32> to vector<1x12x128xf32>
    tpu.vector_store %arg8[%c0_11, %c0_12, %c0_13], %24 {strides = array<i32>} : memref<2x12x128xf32, #tpu.memory_space<vmem>>, vector<1x12x128xf32>,
    %c0_i32 = arith.constant 0 : i32
    %c0_i32_14 = arith.constant 0 : i32
    %c0_i32_15 = arith.constant 0 : i32
    %25 = tpu.memref_slice %arg8[%c0_i32, %c0_i32_14, %c0_i32_15] : memref<2x12x128xf32, #tpu.memory_space<vmem>> -> memref<1x12x128xf32, #tpu.memory_space<vmem>>
    %26 = tpu.memref_squeeze %25 : memref<1x12x128xf32, #tpu.memory_space<vmem>> -> memref<12x128xf32, #tpu.memory_space<vmem>>
    %c0_16 = arith.constant 0 : index
    %c0_17 = arith.constant 0 : index
    %27 = tpu.strided_load %26[%c0_16, %c0_17] {strides = array<i32: 3, 1>} : memref<12x128xf32, #tpu.memory_space<vmem>>, vector<4x128xf32>
    %c0_i32_18 = arith.constant 0 : i32
    %c0_i32_19 = arith.constant 0 : i32
    %c0_i32_20 = arith.constant 0 : i32
    %28 = tpu.memref_slice %arg8[%c0_i32_18, %c0_i32_19, %c0_i32_20] : memref<2x12x128xf32, #tpu.memory_space<vmem>> -> memref<1x12x128xf32, #tpu.memory_space<vmem>>
    %29 = tpu.memref_squeeze %28 : memref<1x12x128xf32, #tpu.memory_space<vmem>> -> memref<12x128xf32, #tpu.memory_space<vmem>>
    %c1 = arith.constant 1 : index
    %c0_21 = arith.constant 0 : index
    %30 = tpu.strided_load %29[%c1, %c0_21] {strides = array<i32: 3, 1>} : memref<12x128xf32, #tpu.memory_space<vmem>>, vector<4x128xf32>
    %31 = arith.maximumf %27, %30 : vector<4x128xf32>
    %c0_i32_22 = arith.constant 0 : i32
    %c0_i32_23 = arith.constant 0 : i32
    %c0_i32_24 = arith.constant 0 : i32
    %32 = tpu.memref_slice %arg8[%c0_i32_22, %c0_i32_23, %c0_i32_24] : memref<2x12x128xf32, #tpu.memory_space<vmem>> -> memref<1x12x128xf32, #tpu.memory_space<vmem>>
    %33 = tpu.memref_squeeze %32 : memref<1x12x128xf32, #tpu.memory_space<vmem>> -> memref<12x128xf32, #tpu.memory_space<vmem>>
    %c2 = arith.constant 2 : index
    %c0_25 = arith.constant 0 : index
    %34 = tpu.strided_load %33[%c2, %c0_25] {strides = array<i32: 3, 1>} : memref<12x128xf32, #tpu.memory_space<vmem>>, vector<4x128xf32>
    %35 = arith.maximumf %31, %34 : vector<4x128xf32>
    %c0_26 = arith.constant 0 : index
    %c0_27 = arith.constant 0 : index
    %36 = vector.load %arg5[%c0_26, %c0_27] : memref<1x128xf32, #tpu.memory_space<vmem>>, vector<1x128xf32>
    %37 = vector.broadcast %36 : vector<1x128xf32> to vector<4x128xf32>
    %38 = arith.addf %35, %37 : vector<4x128xf32>
    %c0_28 = arith.constant 0 : index
    %c0_29 = arith.constant 0 : index
    %c0_30 = arith.constant 0 : index
    %39 = vector.load %arg6[%c0_28, %c0_29, %c0_30] : memref<2x4x128xf32, #tpu.memory_space<vmem>>, vector<1x4x128xf32>
    %40 = vector.shape_cast %39 : vector<1x4x128xf32> to vector<4x128xf32>
    %41 = vector.shape_cast %38 : vector<4x128xf32> to vector<1x4x128xf32>
    tpu.vector_store %arg6[%c0_28, %c0_29, %c0_30], %41 {strides = array<i32>} : memref<2x4x128xf32, #tpu.memory_space<vmem>>, vector<1x4x128xf32>,
    %cst_31 = arith.constant dense<0.000000e+00> : vector<128xf32>
    %42 = vector.multi_reduction <add>, %38, %cst_31 [0] : vector<4x128xf32> to vector<128xf32>
    %43 = vector.shape_cast %42 : vector<128xf32> to vector<1x128xf32>
    %44 = arith.addf %0, %43 : vector<1x128xf32>
    %45 = arith.mulf %38, %38 : vector<4x128xf32>
    %cst_32 = arith.constant dense<0.000000e+00> : vector<128xf32>
    %46 = vector.multi_reduction <add>, %45, %cst_32 [0] : vector<4x128xf32> to vector<128xf32>
    %47 = vector.shape_cast %46 : vector<128xf32> to vector<1x128xf32>
    %48 = arith.addf %1, %47 : vector<1x128xf32>
    %c1_33 = arith.constant 1 : index
    %c0_34 = arith.constant 0 : index
    %c0_35 = arith.constant 0 : index
    %49 = vector.load %arg1[%c1_33, %c0_34, %c0_35] : memref<2x19x128xf32, #tpu.memory_space<vmem>>, vector<1x19x128xf32>
    %50 = vector.shape_cast %49 : vector<1x19x128xf32> to vector<19x128xf32>
    %c0_36 = arith.constant 0 : index
    %c0_37 = arith.constant 0 : index
    %51 = vector.load %arg2[%c0_36, %c0_37] : memref<1x128xf32, #tpu.memory_space<vmem>>, vector<1x128xf32>
    %52 = vector.broadcast %51 : vector<1x128xf32> to vector<19x128xf32>
    %53 = arith.mulf %50, %52 : vector<19x128xf32>
    %c0_38 = arith.constant 0 : index
    %c0_39 = arith.constant 0 : index
    %54 = vector.load %arg3[%c0_38, %c0_39] : memref<1x128xf32, #tpu.memory_space<vmem>>, vector<1x128xf32>
    %55 = vector.broadcast %54 : vector<1x128xf32> to vector<19x128xf32>
    %56 = arith.addf %53, %55 : vector<19x128xf32>
    %cst_40 = arith.constant 0.000000e+00 : f32
    %57 = vector.broadcast %cst_40 : f32 to vector<19x128xf32>
    %58 = arith.maximumf %56, %57 : vector<19x128xf32>
    %59 = vector.extract_strided_slice %58 {offsets = [0, 0], sizes = [12, 128], strides = [1, 1]} : vector<19x128xf32> to vector<12x128xf32>
    %60 = vector.extract_strided_slice %58 {offsets = [1, 0], sizes = [12, 128], strides = [1, 1]} : vector<19x128xf32> to vector<12x128xf32>
    %61 = vector.extract_strided_slice %58 {offsets = [2, 0], sizes = [12, 128], strides = [1, 1]} : vector<19x128xf32> to vector<12x128xf32>
    %62 = vector.extract_strided_slice %58 {offsets = [3, 0], sizes = [12, 128], strides = [1, 1]} : vector<19x128xf32> to vector<12x128xf32>
    %63 = vector.extract_strided_slice %58 {offsets = [4, 0], sizes = [12, 128], strides = [1, 1]} : vector<19x128xf32> to vector<12x128xf32>
    %64 = vector.extract_strided_slice %58 {offsets = [5, 0], sizes = [12, 128], strides = [1, 1]} : vector<19x128xf32> to vector<12x128xf32>
    %65 = vector.extract_strided_slice %58 {offsets = [6, 0], sizes = [12, 128], strides = [1, 1]} : vector<19x128xf32> to vector<12x128xf32>
    %66 = tpu.concatenate %59, %60, %61, %62, %63, %64, %65 in 1 : vector<12x128xf32>, vector<12x128xf32>, vector<12x128xf32>, vector<12x128xf32>, vector<12x128xf32>, vector<12x128xf32>, vector<12x128xf32> -> vector<12x896xf32>
    %c0_41 = arith.constant 0 : index
    %c0_42 = arith.constant 0 : index
    %67 = vector.load %arg4[%c0_41, %c0_42] : memref<896x128xf32, #tpu.memory_space<vmem>>, vector<896x128xf32>
    %cst_43 = arith.constant dense<0.000000e+00> : vector<12x128xf32>
    %68 = tpu.matmul %66, %67, %cst_43 {dimension_numbers = #tpu.dot_dimension_numbers<[1], [0], [0], [1], [0, 0, 1, 1], [], []>} : vector<12x896xf32>, vector<896x128xf32>, vector<12x128xf32> -> vector<12x128xf32>
    %c1_44 = arith.constant 1 : index
    %c0_45 = arith.constant 0 : index
    %c0_46 = arith.constant 0 : index
    %69 = vector.load %arg8[%c1_44, %c0_45, %c0_46] : memref<2x12x128xf32, #tpu.memory_space<vmem>>, vector<1x12x128xf32>
    %70 = vector.shape_cast %69 : vector<1x12x128xf32> to vector<12x128xf32>
    %71 = vector.shape_cast %68 : vector<12x128xf32> to vector<1x12x128xf32>
    tpu.vector_store %arg8[%c1_44, %c0_45, %c0_46], %71 {strides = array<i32>} : memref<2x12x128xf32, #tpu.memory_space<vmem>>, vector<1x12x128xf32>,
    %c1_i32 = arith.constant 1 : i32
    %c0_i32_47 = arith.constant 0 : i32
    %c0_i32_48 = arith.constant 0 : i32
    %72 = tpu.memref_slice %arg8[%c1_i32, %c0_i32_47, %c0_i32_48] : memref<2x12x128xf32, #tpu.memory_space<vmem>> -> memref<1x12x128xf32, #tpu.memory_space<vmem>>
    %73 = tpu.memref_squeeze %72 : memref<1x12x128xf32, #tpu.memory_space<vmem>> -> memref<12x128xf32, #tpu.memory_space<vmem>>
    %c0_49 = arith.constant 0 : index
    %c0_50 = arith.constant 0 : index
    %74 = tpu.strided_load %73[%c0_49, %c0_50] {strides = array<i32: 3, 1>} : memref<12x128xf32, #tpu.memory_space<vmem>>, vector<4x128xf32>
    %c1_i32_51 = arith.constant 1 : i32
    %c0_i32_52 = arith.constant 0 : i32
    %c0_i32_53 = arith.constant 0 : i32
    %75 = tpu.memref_slice %arg8[%c1_i32_51, %c0_i32_52, %c0_i32_53] : memref<2x12x128xf32, #tpu.memory_space<vmem>> -> memref<1x12x128xf32, #tpu.memory_space<vmem>>
    %76 = tpu.memref_squeeze %75 : memref<1x12x128xf32, #tpu.memory_space<vmem>> -> memref<12x128xf32, #tpu.memory_space<vmem>>
    %c1_54 = arith.constant 1 : index
    %c0_55 = arith.constant 0 : index
    %77 = tpu.strided_load %76[%c1_54, %c0_55] {strides = array<i32: 3, 1>} : memref<12x128xf32, #tpu.memory_space<vmem>>, vector<4x128xf32>
    %78 = arith.maximumf %74, %77 : vector<4x128xf32>
    %c1_i32_56 = arith.constant 1 : i32
    %c0_i32_57 = arith.constant 0 : i32
    %c0_i32_58 = arith.constant 0 : i32
    %79 = tpu.memref_slice %arg8[%c1_i32_56, %c0_i32_57, %c0_i32_58] : memref<2x12x128xf32, #tpu.memory_space<vmem>> -> memref<1x12x128xf32, #tpu.memory_space<vmem>>
    %80 = tpu.memref_squeeze %79 : memref<1x12x128xf32, #tpu.memory_space<vmem>> -> memref<12x128xf32, #tpu.memory_space<vmem>>
    %c2_59 = arith.constant 2 : index
    %c0_60 = arith.constant 0 : index
    %81 = tpu.strided_load %80[%c2_59, %c0_60] {strides = array<i32: 3, 1>} : memref<12x128xf32, #tpu.memory_space<vmem>>, vector<4x128xf32>
    %82 = arith.maximumf %78, %81 : vector<4x128xf32>
    %c0_61 = arith.constant 0 : index
    %c0_62 = arith.constant 0 : index
    %83 = vector.load %arg5[%c0_61, %c0_62] : memref<1x128xf32, #tpu.memory_space<vmem>>, vector<1x128xf32>
    %84 = vector.broadcast %83 : vector<1x128xf32> to vector<4x128xf32>
    %85 = arith.addf %82, %84 : vector<4x128xf32>
    %c1_63 = arith.constant 1 : index
    %c0_64 = arith.constant 0 : index
    %c0_65 = arith.constant 0 : index
    %86 = vector.load %arg6[%c1_63, %c0_64, %c0_65] : memref<2x4x128xf32, #tpu.memory_space<vmem>>, vector<1x4x128xf32>
    %87 = vector.shape_cast %86 : vector<1x4x128xf32> to vector<4x128xf32>
    %88 = vector.shape_cast %85 : vector<4x128xf32> to vector<1x4x128xf32>
    tpu.vector_store %arg6[%c1_63, %c0_64, %c0_65], %88 {strides = array<i32>} : memref<2x4x128xf32, #tpu.memory_space<vmem>>, vector<1x4x128xf32>,
    %cst_66 = arith.constant dense<0.000000e+00> : vector<128xf32>
    %89 = vector.multi_reduction <add>, %85, %cst_66 [0] : vector<4x128xf32> to vector<128xf32>
    %90 = vector.shape_cast %89 : vector<128xf32> to vector<1x128xf32>
    %91 = arith.addf %44, %90 : vector<1x128xf32>
    %92 = arith.mulf %85, %85 : vector<4x128xf32>
    %cst_67 = arith.constant dense<0.000000e+00> : vector<128xf32>
    %93 = vector.multi_reduction <add>, %92, %cst_67 [0] : vector<4x128xf32> to vector<128xf32>
    %94 = vector.shape_cast %93 : vector<128xf32> to vector<1x128xf32>
    %95 = arith.addf %48, %94 : vector<1x128xf32>
    %cst_68 = arith.constant 0.000000e+00 : f32
    %96 = vector.broadcast %cst_68 : f32 to vector<6x128xf32>
    %97 = tpu.concatenate %91, %95, %96 in 0 : vector<1x128xf32>, vector<1x128xf32>, vector<6x128xf32> -> vector<8x128xf32>
    %c0_69 = arith.constant 0 : index
    %c0_70 = arith.constant 0 : index
    %c0_71 = arith.constant 0 : index
    %98 = vector.load %arg7[%c0_69, %c0_70, %c0_71] : memref<1x8x128xf32, #tpu.memory_space<vmem>>, vector<1x8x128xf32>
    %99 = vector.shape_cast %98 : vector<1x8x128xf32> to vector<8x128xf32>
    %100 = vector.shape_cast %97 : vector<8x128xf32> to vector<1x8x128xf32>
    tpu.vector_store %arg7[%c0_69, %c0_70, %c0_71], %100 {strides = array<i32>} : memref<1x8x128xf32, #tpu.memory_space<vmem>>, vector<1x8x128xf32>,
    return
  }
  func.func @transform_0(%arg0: i32) -> (i32, i32, i32) {
    %c0_i32 = arith.constant 0 : i32
    %c0_i32_0 = arith.constant 0 : i32
    %c0_i32_1 = arith.constant 0 : i32
    return %arg0, %c0_i32, %c0_i32_0 : i32, i32, i32
  }
  func.func @transform_1(%arg0: i32) -> (i32, i32) {
    %c0_i32 = arith.constant 0 : i32
    %c0_i32_0 = arith.constant 0 : i32
    %c0_i32_1 = arith.constant 0 : i32
    return %c0_i32, %c0_i32_0 : i32, i32
  }
  func.func @transform_2(%arg0: i32) -> (i32, i32) {
    %c0_i32 = arith.constant 0 : i32
    %c0_i32_0 = arith.constant 0 : i32
    %c0_i32_1 = arith.constant 0 : i32
    return %c0_i32, %c0_i32_0 : i32, i32
  }
  func.func @transform_3(%arg0: i32) -> (i32, i32) {
    %c0_i32 = arith.constant 0 : i32
    %c0_i32_0 = arith.constant 0 : i32
    %c0_i32_1 = arith.constant 0 : i32
    return %c0_i32, %c0_i32_0 : i32, i32
  }
  func.func @transform_4(%arg0: i32) -> (i32, i32) {
    %c0_i32 = arith.constant 0 : i32
    %c0_i32_0 = arith.constant 0 : i32
    %c0_i32_1 = arith.constant 0 : i32
    return %c0_i32, %c0_i32_0 : i32, i32
  }
  func.func @transform_5(%arg0: i32) -> (i32, i32, i32) {
    %c0_i32 = arith.constant 0 : i32
    %c0_i32_0 = arith.constant 0 : i32
    %c0_i32_1 = arith.constant 0 : i32
    return %arg0, %c0_i32, %c0_i32_0 : i32, i32, i32
  }
  func.func @transform_6(%arg0: i32) -> (i32, i32, i32) {
    %c0_i32 = arith.constant 0 : i32
    %c0_i32_0 = arith.constant 0 : i32
    %c0_i32_1 = arith.constant 0 : i32
    return %arg0, %c0_i32, %c0_i32_0 : i32, i32, i32
  }
}

</mosaic_0001>

<bundles_post_ra>
// kernel: temporal_replay_convolution.3
= control target key start
LH: loop header
LB: loop body
LE: loop exit
PB: predicated region body
PF: predicated region fallthrough
CT: control target
= control target key end

     0   :  { %vm50_vm0 = vcmask 1046528   ;;  %vm62_vm1 = vcmask 1044480   ;;  %vm56_vm2 = vcmask 1045504   ;;  %vm75_vm3 = vcmask 1042432   ;;  %s2407_s3 = inlined_call_operand.vmem [shape: f32[896,128], index: 3, kind: input, shape index: {}]   ;;  %s2408_s0 = inlined_call_operand.vmem [shape: f32[2,19,128], index: 0, kind: input, shape index: {}]   ;;  %s2409_s1 = inlined_call_operand.vmem [shape: f32[1,128], index: 1, kind: input, shape index: {}]   ;;  %s2410_s2 = inlined_call_operand.vmem [shape: f32[1,128], index: 2, kind: input, shape index: {}]   ;;  %s2411_s4 = inlined_call_operand.vmem [shape: f32[1,128], index: 4, kind: input, shape index: {}]   ;;  %s2412_s5 = inlined_call_operand.vmem [shape: f32[2,4,128], index: 5, kind: output, shape index: {0}]   ;;  %s2413_s6 = inlined_call_operand.vmem [shape: f32[1,8,128], index: 6, kind: output, shape index: {1}]  }
   0x1   :  { %v107_v0 = vld [vmem:[%s2407_s3 + $0x80] sm:$0xff]  ;;  %v108_v1 = vld [vmem:[%s2407_s3 + $0x88] sm:$0xff]  ;;  %v109_v11 = vld [vmem:[%s2407_s3 + $0x90] sm:$0xff]  ;;  %vm83_vm4 = vcmask 1041408   ;;  %vm68_vm5 = vcmask 1043456   ;;  %vm1051_vm6 = vcmask 1040384  }
   0x2   :  { %v139_v2 = vld [vmem:[%s2407_s3 + $0x180] sm:$0xff]  ;;  %v1709_v3 = vpack.c.bf16 %v108_v1, %v107_v0  ;;  %v140_v4 = vld [vmem:[%s2407_s3 + $0x188] sm:$0xff]  ;;  %v110_v13 = vld [vmem:[%s2407_s3 + $0x98] sm:$0xff] }
   0x3   :  { %v91_v5 = vld [vmem:[%s2407_s3] sm:$0xff]  ;;  %v92_v6 = vld [vmem:[%s2407_s3 + $0x8] sm:$0xff]  ;;  %v1720_v7 = vpack.c.bf16 %v140_v4, %v139_v2  ;;  %v141_v14 = vld [vmem:[%s2407_s3 + $0x190] sm:$0xff]  ;;  %v1747_v16 = vpack.c.bf16 %v110_v13, %v109_v11 }
   0x4   :  { %v1722_v8 = vpack.c.bf16 %v92_v6, %v91_v5  ;;  %v123_v9 = vld [vmem:[%s2407_s3 + $0x100] sm:$0xff]  ;;  %v124_v10 = vld [vmem:[%s2407_s3 + $0x108] sm:$0xff]  ;;  %1410 = vmatprep.subr.bf16.mxu0 %v1709_v3  ;;  %v142_v15 = vld [vmem:[%s2407_s3 + $0x198] sm:$0xff] }
   0x5   :  { %v1734_v12 = vpack.c.bf16 %v124_v10, %v123_v9  ;;  %1442 = vmatprep.subr.bf16.mxu1 %v1720_v7  ;;  %v1749_v17 = vpack.c.bf16 %v142_v15, %v141_v14  ;;  %v93_v18 = vld [vmem:[%s2407_s3 + $0x10] sm:$0xff]  ;;  %v94_v19 = vld [vmem:[%s2407_s3 + $0x18] sm:$0xff]  ;;  %v111_v23 = vld [vmem:[%s2407_s3 + $0xa0] sm:$0xff] }
   0x6   :  { %1412 = vmatpush3.bf16.msra.mxu0 %v1722_v8  ;;  %v125_v20 = vld [vmem:[%s2407_s3 + $0x110] sm:$0xff]  ;;  %v1761_v21 = vpack.c.bf16 %v94_v19, %v93_v18  ;;  %v126_v22 = vld [vmem:[%s2407_s3 + $0x118] sm:$0xff]  ;;  %v112_v24 = vld [vmem:[%s2407_s3 + $0xa8] sm:$0xff] }
   0x7   :  { %1444 = vmatpush3.bf16.msra.mxu1 %v1734_v12  ;;  %1414 = vmatprep.subr.bf16.mxu0 %v1747_v16  ;;  %v1774_v25 = vpack.c.bf16 %v126_v22, %v125_v20  ;;  %v1776_v26 = vpack.c.bf16 %v112_v24, %v111_v23  ;;  %v143_v27 = vld [vmem:[%s2407_s3 + $0x1a0] sm:$0xff]  ;;  %v144_v28 = vld [vmem:[%s2407_s3 + $0x1a8] sm:$0xff]  ;;  %v113_v35 = vld [vmem:[%s2407_s3 + $0xb0] sm:$0xff] }
   0x8   :  { %1446 = vmatprep.subr.bf16.mxu1 %v1749_v17  ;;  %v95_v29 = vld [vmem:[%s2407_s3 + $0x20] sm:$0xff]  ;;  %v1787_v30 = vpack.c.bf16 %v144_v28, %v143_v27  ;;  %v96_v31 = vld [vmem:[%s2407_s3 + $0x28] sm:$0xff]  ;;  %v114_v36 = vld [vmem:[%s2407_s3 + $0xb8] sm:$0xff] }
   0x9   :  { %v127_v32 = vld [vmem:[%s2407_s3 + $0x120] sm:$0xff]  ;;  %v128_v33 = vld [vmem:[%s2407_s3 + $0x128] sm:$0xff]  ;;  %v1799_v34 = vpack.c.bf16 %v96_v31, %v95_v29  ;;  %v145_v37 = vld [vmem:[%s2407_s3 + $0x1b0] sm:$0xff]  ;;  %v1814_v39 = vpack.c.bf16 %v114_v36, %v113_v35 }
   0xa   :  { %1416 = vmatpush3.bf16.msra.mxu0 %v1761_v21  ;;  %v1812_v38 = vpack.c.bf16 %v128_v33, %v127_v32  ;;  %v146_v40 = vld [vmem:[%s2407_s3 + $0x1b8] sm:$0xff]  ;;  %v97_v41 = vld [vmem:[%s2407_s3 + $0x30] sm:$0xff]  ;;  %v115_v46 = vld [vmem:[%s2407_s3 + $0xc0] sm:$0xff] }
   0xb   :  { %1448 = vmatpush3.bf16.msra.mxu1 %v1774_v25  ;;  %1418 = vmatprep.subr.bf16.mxu0 %v1776_v26  ;;  %v98_v42 = vld [vmem:[%s2407_s3 + $0x38] sm:$0xff]  ;;  %v1826_v43 = vpack.c.bf16 %v146_v40, %v145_v37  ;;  %v129_v44 = vld [vmem:[%s2407_s3 + $0x130] sm:$0xff]  ;;  %v116_v47 = vld [vmem:[%s2407_s3 + $0xc8] sm:$0xff] }
   0xc   :  { %1450 = vmatprep.subr.bf16.mxu1 %v1787_v30  ;;  %v130_v45 = vld [vmem:[%s2407_s3 + $0x138] sm:$0xff]  ;;  %v147_v48 = vld [vmem:[%s2407_s3 + $0x1c0] sm:$0xff]  ;;  %v148_v49 = vld [vmem:[%s2407_s3 + $0x1c8] sm:$0xff]  ;;  %v1847_v50 = vpack.c.bf16 %v98_v42, %v97_v41  ;;  %v1853_v52 = vpack.c.bf16 %v116_v47, %v115_v46 }
   0xd   :  { %v1851_v51 = vpack.c.bf16 %v130_v45, %v129_v44  ;;  %v99_v53 = vld [vmem:[%s2407_s3 + $0x40] sm:$0xff]  ;;  %v100_v54 = vld [vmem:[%s2407_s3 + $0x48] sm:$0xff]  ;;  %v1865_v56 = vpack.c.bf16 %v148_v49, %v147_v48  ;;  %v117_v58 = vld [vmem:[%s2407_s3 + $0xd0] sm:$0xff] }
   0xe   :  { %1420 = vmatpush3.bf16.msra.mxu0 %v1799_v34  ;;  %v131_v55 = vld [vmem:[%s2407_s3 + $0x140] sm:$0xff]  ;;  %v132_v57 = vld [vmem:[%s2407_s3 + $0x148] sm:$0xff]  ;;  %v118_v59 = vld [vmem:[%s2407_s3 + $0xd8] sm:$0xff]  ;;  %v1883_v62 = vpack.c.bf16 %v100_v54, %v99_v53 }
   0xf   :  { %1452 = vmatpush3.bf16.msra.mxu1 %v1812_v38  ;;  %1422 = vmatprep.subr.bf16.mxu0 %v1814_v39  ;;  %v149_v60 = vld [vmem:[%s2407_s3 + $0x1d0] sm:$0xff]  ;;  %v150_v61 = vld [vmem:[%s2407_s3 + $0x1d8] sm:$0xff]  ;;  %v1887_v63 = vpack.c.bf16 %v132_v57, %v131_v55  ;;  %v1889_v0 = vpack.c.bf16 %v118_v59, %v117_v58  ;;  %v119_v9 = vld [vmem:[%s2407_s3 + $0xe0] sm:$0xff] }
  0x10   :  { %1454 = vmatprep.subr.bf16.mxu1 %v1826_v43  ;;  %v101_v1 = vld [vmem:[%s2407_s3 + $0x50] sm:$0xff]  ;;  %v102_v2 = vld [vmem:[%s2407_s3 + $0x58] sm:$0xff]  ;;  %v1901_v5 = vpack.c.bf16 %v150_v61, %v149_v60  ;;  %v120_v10 = vld [vmem:[%s2407_s3 + $0xe8] sm:$0xff] }
  0x11   :  { %v133_v4 = vld [vmem:[%s2407_s3 + $0x150] sm:$0xff]  ;;  %v134_v6 = vld [vmem:[%s2407_s3 + $0x158] sm:$0xff]  ;;  %v151_v11 = vld [vmem:[%s2407_s3 + $0x1e0] sm:$0xff]  ;;  %v1922_v15 = vpack.c.bf16 %v102_v2, %v101_v1  ;;  %v1937_v23 = vpack.c.bf16 %v120_v10, %v119_v9 }
  0x12   :  { %1424 = vmatpush3.bf16.msra.mxu0 %v1847_v50  ;;  %v152_v13 = vld [vmem:[%s2407_s3 + $0x1e8] sm:$0xff]  ;;  %v103_v14 = vld [vmem:[%s2407_s3 + $0x60] sm:$0xff]  ;;  %v1935_v22 = vpack.c.bf16 %v134_v6, %v133_v4  ;;  %v121_v24 = vld [vmem:[%s2407_s3 + $0xf0] sm:$0xff] }
  0x13   :  { %1456 = vmatpush3.bf16.msra.mxu1 %v1851_v51  ;;  %1426 = vmatprep.subr.bf16.mxu0 %v1853_v52  ;;  %v104_v18 = vld [vmem:[%s2407_s3 + $0x68] sm:$0xff]  ;;  %v135_v19 = vld [vmem:[%s2407_s3 + $0x160] sm:$0xff]  ;;  %v1949_v29 = vpack.c.bf16 %v152_v13, %v151_v11  ;;  %v122_v31 = vld [vmem:[%s2407_s3 + $0xf8] sm:$0xff] }
  0x14   :  { %1458 = vmatprep.subr.bf16.mxu1 %v1865_v56  ;;  %v136_v20 = vld [vmem:[%s2407_s3 + $0x168] sm:$0xff]  ;;  %v22_v27 = vld [vmem:[%s2408_s0] sm:$0xff]  ;;  %v153_v35 = vld [vmem:[%s2407_s3 + $0x1f0] sm:$0xff]  ;;  %v1973_v41 = vpack.c.bf16 %v104_v18, %v103_v14  ;;  %v1982_v45 = vpack.c.bf16 %v122_v31, %v121_v24 }
  0x15   :  { %v23_v28 = vld [vmem:[%s2408_s0 + $0x8] sm:$0xff]  ;;  %v1957_v32 = vld [vmem:[%s2409_s1] ss:$0 sm:$0xff]  ;;  %v154_v36 = vld [vmem:[%s2407_s3 + $0x1f8] sm:$0xff]  ;;  %v1975_v42 = vpack.c.bf16 %v136_v20, %v135_v19 }
  0x16   :  { %1428 = vmatpush3.bf16.msra.mxu0 %v1883_v62  ;;  %v1962_v33 = vld [vmem:[%s2410_s2] ss:$0 sm:$0xff]  ;;  %v32_v37 = vmul.f32 %v1957_v32, %v22_v27  ;;  %v33_v40 = vmul.f32 %v1957_v32, %v23_v28  ;;  %v105_v44 = vld [vmem:[%s2407_s3 + $0x70] sm:$0xff]  ;;  %v106_v46 = vld [vmem:[%s2407_s3 + $0x78] sm:$0xff]  ;;  %v1996_v54 = vpack.c.bf16 %v154_v36, %v153_v35 }
  0x17   :  { %1460 = vmatpush3.bf16.msra.mxu1 %v1887_v63  ;;  %1430 = vmatprep.subr.bf16.mxu0 %v1889_v0  ;;  %v137_v47 = vld [vmem:[%s2407_s3 + $0x170] sm:$0xff]  ;;  %v138_v48 = vld [vmem:[%s2407_s3 + $0x178] sm:$0xff]  ;;  %v171_v55 = vld [vmem:[%s2407_s3 + $0x280] sm:$0xff]  ;;  %v2015_v1 = vpack.c.bf16 %v106_v46, %v105_v44 }
  0x18   :  { %1462 = vmatprep.subr.bf16.mxu1 %v1901_v5  ;;  %v42_v49 = vadd.f32 %v1962_v33, %v32_v37  ;;  %v43_v53 = vadd.f32 %v1962_v33, %v33_v40  ;;  %v172_v59 = vld [vmem:[%s2407_s3 + $0x288] sm:$0xff]  ;;  %v187_v60 = vld [vmem:[%s2407_s3 + $0x300] sm:$0xff]  ;;  %v2017_v2 = vpack.c.bf16 %v138_v48, %v137_v47  ;;  %v173_v24 = vld [vmem:[%s2407_s3 + $0x290] sm:$0xff] }
  0x19   :  { %v188_v61 = vld [vmem:[%s2407_s3 + $0x308] sm:$0xff]  ;;  %v155_v11 = vld [vmem:[%s2407_s3 + $0x200] sm:$0xff]  ;;  %v2034_v19 = vpack.c.bf16 %v172_v59, %v171_v55  ;;  %v174_v27 = vld [vmem:[%s2407_s3 + $0x298] sm:$0xff] }
  0x1a   :  { %1432 = vmatpush3.bf16.msra.mxu0 %v1922_v15  ;;  %v2001_v57 = vmax.f32 %v42_v49, 0.0  ;;  %v2003_v58 = vmax.f32 %v43_v53, 0.0  ;;  %v156_v13 = vld [vmem:[%s2407_s3 + $0x208] sm:$0xff]  ;;  %v2036_v20 = vpack.c.bf16 %v188_v61, %v187_v60  ;;  %v189_v35 = vld [vmem:[%s2407_s3 + $0x310] sm:$0xff]  ;;  %v190_v36 = vld [vmem:[%s2407_s3 + $0x318] sm:$0xff]  ;;  %v2057_v44 = vpack.c.bf16 %v174_v27, %v173_v24 }
  0x1b   :  { %1464 = vmatpush3.bf16.msra.mxu1 %v1935_v22  ;;  %1434 = vmatprep.subr.bf16.mxu0 %v1937_v23  ;;  %v2053_v37 = vpack.c.bf16 %v156_v13, %v155_v11  ;;  %v157_v46 = vld [vmem:[%s2407_s3 + $0x210] sm:$0xff]  ;;  %v158_v47 = vld [vmem:[%s2407_s3 + $0x218] sm:$0xff]  ;;  %v2067_v48 = vpack.c.bf16 %v190_v36, %v189_v35  ;;  %v175_v49 = vld [vmem:[%s2407_s3 + $0x2a0] sm:$0xff] }
  0x1c   :  { %1466 = vmatprep.subr.bf16.mxu1 %v1949_v29  ;;  %v51_v4 = vrot.slane %v2001_v57, 1  ;;  %v52_v6 = vrot.slane %v2003_v58, 1  ;;  %v63_v9 = vrot.slane %v2001_v57, 3  ;;  %v64_v10 = vrot.slane %v2003_v58, 3  ;;  %v176_v53 = vld [vmem:[%s2407_s3 + $0x2a8] sm:$0xff]  ;;  %v191_v55 = vld [vmem:[%s2407_s3 + $0x320] sm:$0xff] }
  0x1d   :  { %v57_v14 = vrot.slane %v2001_v57, 2  ;;  %v58_v18 = vrot.slane %v2003_v58, 2  ;;  %v192_v59 = vld [vmem:[%s2407_s3 + $0x328] sm:$0xff]  ;;  %v76_v60 = vrot.slane %v2001_v57, 5  ;;  %v2414_v61 = vrot.slane %v2003_v58, 5  ;;  %v193_v35 = vld [vmem:[%s2407_s3 + $0x330] sm:$0xff] }
  0x1e   :  { %1436 = vmatpush3.bf16.msra.mxu0 %v1973_v41  ;;  %v53_v28 = vsel %vm50_vm0, %v51_v4, %v52_v6  ;;  %v65_v31 = vsel %vm62_vm1, %v63_v9, %v64_v10  ;;  %v2085_v4 = vpack.c.bf16 %v158_v47, %v157_v46  ;;  %v84_v9 = vrot.slane %v2001_v57, 6  ;;  %v160_v24 = vld [vmem:[%s2407_s3 + $0x228] sm:$0xff]  ;;  %v194_v36 = vld [vmem:[%s2407_s3 + $0x338] sm:$0xff]  ;;  %v1069_v46 = vld [vmem:[%s2408_s0 + $0x20] sm:$0xff] }
  0x1f   :  { %1468 = vmatpush3.bf16.msra.mxu1 %v1975_v42  ;;  %1438 = vmatprep.subr.bf16.mxu0 %v1982_v45  ;;  %v59_v40 = vsel %vm56_vm2, %v57_v14, %v58_v18  ;;  %v2415_v11 = vrot.slane %v2003_v58, 6  ;;  %v2091_v13 = vpack.c.bf16 %v176_v53, %v175_v49  ;;  %v159_v14 = vld [vmem:[%s2407_s3 + $0x220] sm:$0xff]  ;;  %v2100_v27 = vpack.c.bf16 %v192_v59, %v191_v55  ;;  %v1070_v49 = vld [vmem:[%s2408_s0 + $0x28] sm:$0x7]  ;;  %v162_v55 = vld [vmem:[%s2407_s3 + $0x238] sm:$0xff] }
  0x20   :  { %1470 = vmatprep.subr.bf16.mxu1 %v1996_v54  ;;  %267 = vmatprep.mubr.f32.mxu0 %v53_v28  ;;  %v177_v28 = vld [vmem:[%s2407_s3 + $0x2b0] sm:$0xff]  ;;  %v551_v59 = vmul.f32 %v1070_v49, %v1957_v32 }
  0x21   :  { %342 = vmatprep.mubr.f32.mxu1 %v65_v31  ;;  %v178_v31 = vld [vmem:[%s2407_s3 + $0x2b8] sm:$0xff]  ;;  %v86_v47 = vsel %vm83_vm4, %v84_v9, %v2415_v11  ;;  %v179_v9 = vld [vmem:[%s2407_s3 + $0x2c0] sm:$0xff]  ;;  %v165_v11 = vld [vmem:[%s2407_s3 + $0x250] sm:$0xff] }
  0x22   :  { %1440 = vmatpush3.bf16.msra.mxu0 %v2015_v1  ;;  %v2133_v53 = vpack.c.bf16 %v178_v31, %v177_v28  ;;  %v196_v28 = vld [vmem:[%s2407_s3 + $0x348] sm:$0xff]  ;;  %v2158_v31 = vadd.f32 %v1962_v33, %v551_v59  ;;  %v166_v59 = vld [vmem:[%s2407_s3 + $0x258] sm:$0xff] }
  0x23   :  { %1472 = vmatpush3.bf16.msra.mxu1 %v2017_v2  ;;  %1474 = vmatprep.subr.bf16.mxu0 %v2034_v19 }
  0x24   :  { %1506 = vmatprep.subr.bf16.mxu1 %v2036_v20  ;;  %2427 = vst [vmem:[#allocation4_spill] sm:$0xff] %v2133_v53  ;;  %2429 = vst [vmem:[#allocation6_spill] sm:$0xff] %v2158_v31 }
  0x25   :  { %268 = vmatmul.mubr.f32.vlgmr.msra.gmra.mrb[0].mxu0 %v2001_v57 }
  0x26   :  { %343 = vmatmul.mubr.f32.vlgmr.msra.gmra.mrb[0].mxu1 %v59_v40  ;;  %1476 = vmatpush3.bf16.msra.mxu0 %v2053_v37  ;;  %v78_v40 = vsel %vm75_vm3, %v76_v60, %v2414_v61  ;;  %v2143_v60 = vpack.c.bf16 %v194_v36, %v193_v35 }
  0x27   :  { %1508 = vmatpush3.bf16.msra.mxu1 %v2036_v20  ;;  %1478 = vmatprep.subr.bf16.mxu0 %v2057_v44 }
  0x28   :  { %1510 = vmatprep.subr.bf16.mxu1 %v2067_v48  ;;  %272 = vmatprep.mubr.f32.mxu0 %v52_v6  ;;  %v2122_v6 = vpack.c.bf16 %v160_v24, %v159_v14  ;;  %2428 = vst [vmem:[#allocation5_spill] sm:$0xff] %v2143_v60  ;;  %v180_v14 = vld [vmem:[%s2407_s3 + $0x2c8] sm:$0xff]  ;;  %v195_v24 = vld [vmem:[%s2407_s3 + $0x340] sm:$0xff] }
  0x29   :  { %347 = vmatprep.mubr.f32.mxu1 %v64_v10  ;;  %273 = vmatmul.mubr.f32.gmra.mrb[2].mxu0 %v2003_v58  ;;  %v550_v10 = vmul.f32 %v1069_v46, %v1957_v32  ;;  %v163_v46 = vld [vmem:[%s2407_s3 + $0x240] sm:$0xff]  ;;  %v2175_v49 = vpack.c.bf16 %v196_v28, %v195_v24 }
  0x2a   :  { %1480 = vmatpush3.bf16.msra.mxu0 %v2085_v4  ;;  %2426 = vst [vmem:[#allocation3_spill] sm:$0xff] %v2122_v6  ;;  %348 = vmatmul.mubr.f32.gmra.mrb[2].mxu1 %v58_v18  ;;  %v161_v18 = vld [vmem:[%s2407_s3 + $0x230] sm:$0xff] }
  0x2b   :  { %1512 = vmatpush3.bf16.msra.mxu1 %v2067_v48  ;;  %1482 = vmatprep.subr.bf16.mxu0 %v2091_v13  ;;  %v2161_v35 = vpack.c.bf16 %v162_v55, %v161_v18  ;;  %v560_v36 = vadd.f32 %v1962_v33, %v550_v10  ;;  %v181_v10 = vld [vmem:[%s2407_s3 + $0x2d0] sm:$0xff]  ;;  %v182_v18 = vld [vmem:[%s2407_s3 + $0x2d8] sm:$0xff] }
  0x2c   :  { %1514 = vmatprep.subr.bf16.mxu1 %v2100_v27  ;;  %417 = vmatprep.mubr.f32.mxu0 %v78_v40  ;;  %v2166_v40 = vpack.c.bf16 %v180_v14, %v179_v9  ;;  %v24_v55 = vld [vmem:[%s2408_s0 + $0x10] sm:$0x7]  ;;  %v198_v14 = vld [vmem:[%s2407_s3 + $0x358] sm:$0xff]  ;;  %v2200_v61 = vpack.c.bf16 %v182_v18, %v181_v10  ;;  %v184_v10 = vld [vmem:[%s2407_s3 + $0x2e8] sm:$0xff] }
  0x2d   :  { %1371 = vmatprep.mubr.f32.mxu1 %v86_v47  ;;  %2430 = vst [vmem:[#allocation7_spill] sm:$0xff] %v2161_v35  ;;  %v164_v47 = vld [vmem:[%s2407_s3 + $0x248] sm:$0xff]  ;;  %v197_v9 = vld [vmem:[%s2407_s3 + $0x350] sm:$0xff]  ;;  %v2196_v28 = vmax.f32 %v560_v36, 0.0  ;;  %v1068_v36 = vld [vmem:[%s2408_s0 + $0x18] sm:$0xff] }
  0x2e   :  { %1484 = vmatpush3.bf16.msra.mxu0 %v2122_v6  ;;  %2431 = vst [vmem:[#allocation8_spill] sm:$0xff] %v2166_v40  ;;  %v2194_v24 = vpack.c.bf16 %v164_v47, %v163_v46  ;;  %2432 = vst [vmem:[#allocation9_spill] sm:$0xff] %v2200_v61  ;;  %v2213_v46 = vpack.c.bf16 %v198_v14, %v197_v9  ;;  %v183_v47 = vld [vmem:[%s2407_s3 + $0x2e0] sm:$0xff]  ;;  %v200_v9 = vld [vmem:[%s2407_s3 + $0x368] sm:$0xff]  ;;  %v2231_v14 = vpack.c.bf16 %v166_v59, %v165_v11 }
  0x2f   :  { %1516 = vmatpush3.bf16.msra.mxu1 %v2100_v27  ;;  %1486 = vmatprep.subr.bf16.mxu0 %v2133_v53  ;;  %v2423_v18 = vrot.slane %v2196_v28, 5  ;;  %v549_v53 = vmul.f32 %v1068_v36, %v1957_v32  ;;  %v168_v11 = vld [vmem:[%s2407_s3 + $0x268] sm:$0xff]  ;;  %v185_v59 = vld [vmem:[%s2407_s3 + $0x2f0] sm:$0xff]  ;;  %v186_v36 = vld [vmem:[%s2407_s3 + $0x2f8] sm:$0xff] }
  0x30   :  { %1518 = vmatprep.subr.bf16.mxu1 %v2143_v60 }
  0x32   :  { %1488 = vmatpush3.bf16.msra.mxu0 %v2161_v35  ;;  %v34_v35 = vmul.f32 %v1957_v32, %v24_v55  ;;  %v2433_v55 = vmax.f32 %v2158_v31, 0.0  ;;  %v167_v31 = vld [vmem:[%s2407_s3 + $0x260] sm:$0xff] }
  0x33   :  { %1520 = vmatpush3.bf16.msra.mxu1 %v2143_v60  ;;  %1490 = vmatprep.subr.bf16.mxu0 %v2166_v40  ;;  %v199_v60 = vld [vmem:[%s2407_s3 + $0x360] sm:$0xff] }
  0x34   :  { %1522 = vmatprep.subr.bf16.mxu1 %v2175_v49  ;;  %v591_v40 = vrot.slane %v2433_v55, 5  ;;  %v2241_v55 = vpack.c.bf16 %v184_v10, %v183_v47  ;;  %v44_v32 = vadd.f32 %v1962_v33, %v34_v35  ;;  %v201_v47 = vld [vmem:[%s2407_s3 + $0x370] sm:$0xff]  ;;  %v202_v35 = vld [vmem:[%s2407_s3 + $0x378] sm:$0xff]  ;;  %v559_v10 = vadd.f32 %v1962_v33, %v549_v53 }
  0x35   :  { %v69_v53 = vrot.slane %v2001_v57, 4  ;;  %v578_v57 = vrot.slane %v2196_v28, 3 }
  0x36   :  { %1492 = vmatpush3.bf16.msra.mxu0 %v2194_v24  ;;  %v2237_v6 = vsel %vm75_vm3, %v2423_v18, %v591_v40  ;;  %v2251_v40 = vpack.c.bf16 %v200_v9, %v199_v60  ;;  %v2266_v60 = vpack.c.bf16 %v168_v11, %v167_v31  ;;  %v2271_v9 = vpack.c.bf16 %v186_v36, %v185_v59  ;;  %v169_v18 = vld [vmem:[%s2407_s3 + $0x270] sm:$0xff] }
  0x37   :  { %2434 = vst [vmem:[#allocation10_spill] sm:$0xff] %v2237_v6  ;;  %1524 = vmatpush3.bf16.msra.mxu1 %v2175_v49  ;;  %1494 = vmatprep.subr.bf16.mxu0 %v2200_v61  ;;  %v170_v6 = vld [vmem:[%s2407_s3 + $0x278] sm:$0xff]  ;;  %v47_v61 = vmax.f32 %v44_v32, 0.0  ;;  %v2280_v31 = vpack.c.bf16 %v202_v35, %v201_v47  ;;  %v70_v11 = vrot.slane %v2003_v58, 4  ;;  %v2287_v59 = vmax.f32 %v559_v10, 0.0 }
  0x38   :  { %1526 = vmatprep.subr.bf16.mxu1 %v2213_v46  ;;  %v2283_v33 = vpack.c.bf16 %v170_v6, %v169_v18  ;;  %v2436_v47 = vrot.slane %v2003_v58, 6 }
  0x39   :  { %v87_v32 = vrot.slane %v47_v61, 6  ;;  %v79_v36 = vrot.slane %v47_v61, 5  ;;  %v71_v6 = vsel %vm68_vm5, %v69_v53, %v70_v11  ;;  %v577_v18 = vrot.slane %v2287_v59, 3 }
  0x3a   :  { %1496 = vmatpush3.bf16.msra.mxu0 %v2231_v14  ;;  %2435 = vst [vmem:[#allocation11_spill] sm:$0xff] %v2283_v33  ;;  %v567_v10 = vrot.slane %v2287_v59, 1  ;;  %v568_v61 = vrot.slane %v2196_v28, 1  ;;  %v2437_v53 = vrot.slane %v2003_v58, 5 }
  0x3b   :  { %1528 = vmatpush3.bf16.msra.mxu1 %v2213_v46  ;;  %1498 = vmatprep.subr.bf16.mxu0 %v2241_v55  ;;  %v88_v35 = vsel %vm83_vm4, %v2436_v47, %v87_v32 }
  0x3c   :  { %1530 = vmatprep.subr.bf16.mxu1 %v2251_v40  ;;  %v569_v32 = vsel %vm50_vm0, %v567_v10, %v568_v61 }
  0x3e   :  { %1500 = vmatpush3.bf16.msra.mxu0 %v2266_v60 }
  0x3f   :  { %1532 = vmatpush3.bf16.msra.mxu1 %v2251_v40  ;;  %1502 = vmatprep.subr.bf16.mxu0 %v2271_v9 }
  0x40   :  { %1534 = vmatprep.subr.bf16.mxu1 %v2280_v31 }
  0x42   :  { %1504 = vmatpush3.bf16.msra.mxu0 %v2283_v33  ;;  %v80_v33 = vsel %vm75_vm3, %v2437_v53, %v79_v36 }
  0x43   :  { %1536 = vmatpush3.bf16.msra.mxu1 %v2280_v31  ;;  %1538 = vmatprep.subr.bf16.mxu0 %v1709_v3  ;;  %v579_v3 = vsel %vm62_vm1, %v577_v18, %v578_v57 }
  0x44   :  { %1570 = vmatprep.subr.bf16.mxu1 %v1720_v7  ;;  %v572_v7 = vrot.slane %v2287_v59, 2 }
  0x45   :  { %418 = vmatmul.mubr.f32.vlgmr.msra.gmra.mrb[4].mxu0 %v71_v6  ;;  %v1067_v6 = vld [vmem:[%s2411_s4] ss:$0 sm:$0xff] }
  0x46   :  { %1372 = vmatmul.mubr.f32.vlgmr.msra.gmra.mrb[4].mxu1 %v88_v35  ;;  %1540 = vmatpush3.bf16.msra.mxu0 %v1722_v8  ;;  %v573_v8 = vrot.slane %v2196_v28, 2 }
  0x47   :  { %1572 = vmatpush3.bf16.msra.mxu1 %v1734_v12  ;;  %422 = vmatprep.mubr.f32.mxu0 %v80_v33 }
  0x48   :  { %1542 = vmatprep.subr.bf16.mxu0 %v1747_v16  ;;  %1574 = vmatprep.subr.bf16.mxu1 %v1749_v17  ;;  %v574_v12 = vsel %vm56_vm2, %v572_v7, %v573_v8  ;;  %v588_v16 = vrot.slane %v2287_v59, 5  ;;  %v595_v17 = vrot.slane %v2287_v59, 6 }
  0x49   :  { %423 = vmatmul.mubr.f32.gmra.mrb[6].mxu0 %v70_v11  ;;  %853 = vmatprep.mubr.f32.mxu1 %v579_v3 }
  0x4a   :  { %1544 = vmatpush3.bf16.msra.mxu0 %v1761_v21  ;;  %778 = vmatprep.mubr.f32.mxu0 %v569_v32  ;;  %v596_v21 = vrot.slane %v2196_v28, 6 }
  0x4b   :  { %1576 = vmatpush3.bf16.msra.mxu1 %v1774_v25  ;;  %1546 = vmatprep.subr.bf16.mxu0 %v1776_v26  ;;  %v2438_v25 = vrot.slane %v2196_v28, 5 }
  0x4c   :  { %1578 = vmatprep.subr.bf16.mxu1 %v1787_v30  ;;  %v597_v30 = vsel %vm83_vm4, %v595_v17, %v596_v21 }
  0x4d   :  { %v590_v26 = vsel %vm75_vm3, %v588_v16, %v2438_v25 }
  0x4e   :  { %1548 = vmatpush3.bf16.msra.mxu0 %v1799_v34  ;;  %v2439_v34 = vld [vmem:[#allocation3_spill] sm:$0xff] }
  0x4f   :  { %1580 = vmatpush3.bf16.msra.mxu1 %v1812_v38  ;;  %1550 = vmatprep.subr.bf16.mxu0 %v1814_v39  ;;  %v2440_v38 = vld [vmem:[#allocation4_spill] sm:$0xff]  ;;  %v2441_v39 = vld [vmem:[#allocation5_spill] sm:$0xff] }
  0x50   :  { %1582 = vmatprep.subr.bf16.mxu1 %v1826_v43  ;;  %v2442_v43 = vld [vmem:[#allocation7_spill] sm:$0xff] }
  0x52   :  { %1552 = vmatpush3.bf16.msra.mxu0 %v1847_v50  ;;  %v2443_v50 = vld [vmem:[#allocation8_spill] sm:$0xff] }
  0x53   :  { %1584 = vmatpush3.bf16.msra.mxu1 %v1851_v51  ;;  %1554 = vmatprep.subr.bf16.mxu0 %v1853_v52  ;;  %v2444_v51 = vld [vmem:[#allocation9_spill] sm:$0xff]  ;;  %v582_v52 = vrot.slane %v2287_v59, 4 }
  0x54   :  { %1586 = vmatprep.subr.bf16.mxu1 %v1865_v56  ;;  %v583_v56 = vrot.slane %v2196_v28, 4 }
  0x56   :  { %1556 = vmatpush3.bf16.msra.mxu0 %v1883_v62  ;;  %v2445_v62 = vld [vmem:[#allocation6_spill] sm:$0xff] }
  0x57   :  { %1588 = vmatpush3.bf16.msra.mxu1 %v1887_v63  ;;  %1558 = vmatprep.subr.bf16.mxu0 %v1889_v0  ;;  %v2446_v63 = vmax.f32 %v2445_v62, 0.0 }
  0x58   :  { %1590 = vmatprep.subr.bf16.mxu1 %v1901_v5  ;;  %v2447_v5 = vld [vmem:[#allocation11_spill] sm:$0xff] }
  0x59   :  { %v598_v0 = vrot.slane %v2446_v63, 6 }
  0x5a   :  { %1560 = vmatpush3.bf16.msra.mxu0 %v1922_v15  ;;  %v584_v15 = vsel %vm68_vm5, %v582_v52, %v583_v56 }
  0x5b   :  { %1592 = vmatpush3.bf16.msra.mxu1 %v1935_v22  ;;  %1562 = vmatprep.subr.bf16.mxu0 %v1937_v23  ;;  %v599_v22 = vsel %vm83_vm4, %v596_v21, %v598_v0  ;;  %v2448_v23 = vld [vmem:[#allocation10_spill] sm:$0xff] }
  0x5c   :  { %1594 = vmatprep.subr.bf16.mxu1 %v1949_v29 }
  0x5e   :  { %1564 = vmatpush3.bf16.msra.mxu0 %v1973_v41 }
  0x5f   :  { %1596 = vmatpush3.bf16.msra.mxu1 %v1975_v42  ;;  %1566 = vmatprep.subr.bf16.mxu0 %v1982_v45 }
  0x60   :  { %1598 = vmatprep.subr.bf16.mxu1 %v1996_v54 }
  0x62   :  { %1568 = vmatpush3.bf16.msra.mxu0 %v2015_v1 }
  0x63   :  { %1600 = vmatpush3.bf16.msra.mxu1 %v2017_v2  ;;  %1602 = vmatprep.subr.bf16.mxu0 %v2034_v19 }
  0x64   :  { %1634 = vmatprep.subr.bf16.mxu1 %v2036_v20 }
  0x65   :  { %779 = vmatmul.mubr.f32.vlgmr.msra.gmra.mrb[8].mxu0 %v2287_v59 }
  0x66   :  { %854 = vmatmul.mubr.f32.vlgmr.msra.gmra.mrb[6].mxu1 %v574_v12  ;;  %1604 = vmatpush3.bf16.msra.mxu0 %v2053_v37 }
  0x67   :  { %1606 = vmatprep.subr.bf16.mxu0 %v2057_v44  ;;  %1636 = vmatpush3.bf16.msra.mxu1 %v2036_v20 }
  0x68   :  { %1638 = vmatprep.subr.bf16.mxu1 %v2067_v48  ;;  %783 = vmatprep.mubr.f32.mxu0 %v568_v61 }
  0x69   :  { %858 = vmatprep.mubr.f32.mxu1 %v578_v57  ;;  %784 = vmatmul.mubr.f32.gmra.mrb[10].mxu0 %v2196_v28 }
  0x6a   :  { %1608 = vmatpush3.bf16.msra.mxu0 %v2085_v4  ;;  %859 = vmatmul.mubr.f32.gmra.mrb[8].mxu1 %v573_v8 }
  0x6b   :  { %1610 = vmatprep.subr.bf16.mxu0 %v2091_v13  ;;  %1640 = vmatpush3.bf16.msra.mxu1 %v2067_v48 }
  0x6c   :  { %1642 = vmatprep.subr.bf16.mxu1 %v2100_v27  ;;  %928 = vmatprep.mubr.f32.mxu0 %v590_v26 }
  0x6d   :  { %1406 = vmatprep.mubr.f32.mxu1 %v597_v30 }
  0x6e   :  { %1612 = vmatpush3.bf16.msra.mxu0 %v2439_v34 }
  0x6f   :  { %1614 = vmatprep.subr.bf16.mxu0 %v2440_v38  ;;  %1644 = vmatpush3.bf16.msra.mxu1 %v2100_v27 }
  0x70   :  { %1646 = vmatprep.subr.bf16.mxu1 %v2441_v39 }
  0x72   :  { %1616 = vmatpush3.bf16.msra.mxu0 %v2442_v43 }
  0x73   :  { %1618 = vmatprep.subr.bf16.mxu0 %v2443_v50  ;;  %1648 = vmatpush3.bf16.msra.mxu1 %v2441_v39 }
  0x74   :  { %1650 = vmatprep.subr.bf16.mxu1 %v2175_v49 }
  0x76   :  { %1620 = vmatpush3.bf16.msra.mxu0 %v2194_v24 }
  0x77   :  { %1622 = vmatprep.subr.bf16.mxu0 %v2444_v51  ;;  %1652 = vmatpush3.bf16.msra.mxu1 %v2175_v49 }
  0x78   :  { %1654 = vmatprep.subr.bf16.mxu1 %v2213_v46 }
  0x7a   :  { %1624 = vmatpush3.bf16.msra.mxu0 %v2231_v14 }
  0x7b   :  { %1626 = vmatprep.subr.bf16.mxu0 %v2241_v55  ;;  %1656 = vmatpush3.bf16.msra.mxu1 %v2213_v46 }
  0x7c   :  { %1658 = vmatprep.subr.bf16.mxu1 %v2251_v40 }
  0x7e   :  { %1628 = vmatpush3.bf16.msra.mxu0 %v2266_v60 }
  0x7f   :  { %1630 = vmatprep.subr.bf16.mxu0 %v2271_v9  ;;  %1660 = vmatpush3.bf16.msra.mxu1 %v2251_v40 }
  0x80   :  { %1662 = vmatprep.subr.bf16.mxu1 %v2280_v31 }
  0x82   :  { %1632 = vmatpush3.bf16.msra.mxu0 %v2447_v5 }
  0x83   :  { %1664 = vmatpush3.bf16.msra.mxu1 %v2280_v31 }
  0x85   :  { %929 = vmatmul.mubr.f32.vlgmr.msra.gmra.mrb[12].mxu0 %v584_v15 }
  0x86   :  { %933 = vmatprep.mubr.f32.mxu0 %v2448_v23  ;;  %1407 = vmatmul.mubr.f32.vlgmr.msra.gmra.mrb[10].mxu1 %v599_v22 }
  0x89   :  { %934 = vmatmul.mubr.f32.gmra.mrb[14].mxu0 %v583_v56 }
  0xf8   :  { %v1107_v29 = vpop.f32.mrb[0].mxu0 }
  0xf9   :  { %v1145_v41 = vpop.f32.mrb[0].mxu1  ;;  %v1108_v42 = vpop.f32.mrb[1].mxu0 }
  0xfa   :  { %v1109_v45 = vadd.f32 %v1108_v42, %v1107_v29  ;;  %v1146_v54 = vpop.f32.mrb[1].mxu1 }
  0xfb   :  { %v1147_v58 = vadd.f32 %v1146_v54, %v1145_v41 }
  0xfc   :  { %v1110_v1 = vpop.f32.mrb[2].mxu0 }
  0xfd   :  { %v345_v2 = vadd.f32 %v1147_v58, %v1109_v45  ;;  %v1148_v19 = vpop.f32.mrb[2].mxu1  ;;  %v1111_v20 = vpop.f32.mrb[3].mxu0 }
  0xfe   :  { %v1112_v37 = vadd.f32 %v1111_v20, %v1110_v1  ;;  %v1149_v44 = vpop.f32.mrb[3].mxu1 }
  0xff   :  { %v1150_v48 = vadd.f32 %v1149_v44, %v1148_v19 }
 0x101   :  { %v350_v4 = vadd.f32 %v1150_v48, %v1112_v37 }
 0x118   :  { %v1183_v13 = vpop.f32.mrb[4].mxu0 }
 0x119   :  { %v1184_v27 = vpop.f32.mrb[5].mxu0  ;;  %v1373_v49 = vpop.f32.mrb[4].mxu1 }
 0x11a   :  { %v1185_v24 = vadd.f32 %v1184_v27, %v1183_v13  ;;  %v494_v28 = vpop.f32.mrb[5].mxu1 }
 0x11c   :  { %v1186_v46 = vpop.f32.mrb[6].mxu0  ;;  %v420_v14 = vadd.f32 %v1185_v24, %v345_v2 }
 0x11d   :  { %v1187_v55 = vpop.f32.mrb[7].mxu0 }
 0x11e   :  { %v1188_v40 = vadd.f32 %v1187_v55, %v1186_v46  ;;  %v495_v60 = vadd.f32 %v494_v28, %v420_v14 }
 0x120   :  { %v425_v9 = vadd.f32 %v1188_v40, %v350_v4  ;;  %503 = vst [vmem:[#allocation2] sm:$0xff] %v495_v60 }
 0x122   :  { %v500_v31 = vadd.f32 %v1373_v49, %v425_v9 }
 0x124   :  { %504 = vst [vmem:[#allocation2 + $0x8] sm:$0xf] %v500_v31 }
 0x12b   :  { %v505_v33 = vld [vmem:[#allocation2] ss:$3 sm:$0xf]  ;;  %v507_v11 = vld [vmem:[#allocation2 + $0x1] ss:$3 sm:$0xf] }
 0x12c   :  { %v508_v59 = vmax.f32 %v505_v33, %v507_v11  ;;  %v510_v36 = vld [vmem:[#allocation2 + $0x2] ss:$3 sm:$0xf] }
 0x12e   :  { %v511_v18 = vmax.f32 %v508_v59, %v510_v36 }
 0x130   :  { %v519_v57 = vadd.f32 %v1067_v6, %v511_v18 }
 0x132   :  { %520 = vst [vmem:[%s2412_s5] sm:$0xf] %v519_v57  ;;  %v529_v0 = vmul.f32 %v519_v57, %v519_v57  ;;  %v521_v5 = vsel %vm68_vm5, %v519_v57, 0.0 }
 0x133   :  { %v522_v22 = vrot.slane %v521_v5, 4 }
 0x134   :  { %v530_v15 = vsel %vm68_vm5, %v529_v0, 0.0 }
 0x135   :  { %v531_v23 = vrot.slane %v530_v15, 4  ;;  %v523_v45 = vadd.f32 %v522_v22, %v521_v5 }
 0x137   :  { %v532_v1 = vadd.f32 %v531_v23, %v530_v15  ;;  %v524_v19 = vrot.slane %v523_v45, 2 }
 0x138   :  { %v1239_v47 = vpop.f32.mrb[8].mxu0 }
 0x139   :  { %v1277_v35 = vpop.f32.mrb[6].mxu1  ;;  %v1240_v10 = vpop.f32.mrb[9].mxu0  ;;  %v533_v44 = vrot.slane %v532_v1, 2  ;;  %v525_v13 = vadd.f32 %v524_v19, %v523_v45 }
 0x13a   :  { %v1241_v61 = vadd.f32 %v1240_v10, %v1239_v47  ;;  %v1278_v53 = vpop.f32.mrb[7].mxu1 }
 0x13b   :  { %v1279_v3 = vadd.f32 %v1278_v53, %v1277_v35  ;;  %v534_v24 = vadd.f32 %v533_v44, %v532_v1  ;;  %v526_v14 = vrot.slane %v525_v13, 1 }
 0x13c   :  { %v1242_v32 = vpop.f32.mrb[10].mxu0 }
 0x13d   :  { %v856_v7 = vadd.f32 %v1279_v3, %v1241_v61  ;;  %v1280_v8 = vpop.f32.mrb[8].mxu1  ;;  %v1243_v12 = vpop.f32.mrb[11].mxu0  ;;  %v535_v60 = vrot.slane %v534_v24, 1  ;;  %v527_v33 = vadd.f32 %v526_v14, %v525_v13 }
 0x13e   :  { %v1244_v16 = vadd.f32 %v1243_v12, %v1242_v32  ;;  %v1281_v17 = vpop.f32.mrb[9].mxu1 }
 0x13f   :  { %v1282_v21 = vadd.f32 %v1281_v17, %v1280_v8  ;;  %v536_v36 = vadd.f32 %v535_v60, %v534_v24 }
 0x141   :  { %v861_v25 = vadd.f32 %v1282_v21, %v1244_v16 }
 0x158   :  { %v1315_v26 = vpop.f32.mrb[12].mxu0 }
 0x159   :  { %v1316_v30 = vpop.f32.mrb[13].mxu0  ;;  %v1408_v34 = vpop.f32.mrb[10].mxu1 }
 0x15a   :  { %v1317_v38 = vadd.f32 %v1316_v30, %v1315_v26  ;;  %v1005_v39 = vpop.f32.mrb[11].mxu1 }
 0x15c   :  { %v1318_v43 = vpop.f32.mrb[14].mxu0  ;;  %v931_v50 = vadd.f32 %v1317_v38, %v856_v7 }
 0x15d   :  { %v1319_v51 = vpop.f32.mrb[15].mxu0 }
 0x15e   :  { %v1320_v52 = vadd.f32 %v1319_v51, %v1318_v43  ;;  %v1006_v56 = vadd.f32 %v1005_v39, %v931_v50 }
 0x160   :  { %v936_v62 = vadd.f32 %v1320_v52, %v861_v25  ;;  %1015 = vst [vmem:[#allocation2 + $0x10] sm:$0xff] %v1006_v56 }
 0x162   :  { %v1011_v63 = vadd.f32 %v1408_v34, %v936_v62 }
 0x164   :  { %1016 = vst [vmem:[#allocation2 + $0x18] sm:$0xf] %v1011_v63 }
 0x16b   :  { %v1017_v29 = vld [vmem:[#allocation2 + $0x10] ss:$3 sm:$0xf]  ;;  %v1019_v41 = vld [vmem:[#allocation2 + $0x11] ss:$3 sm:$0xf] }
 0x16c   :  { %v1020_v42 = vmax.f32 %v1017_v29, %v1019_v41  ;;  %v1022_v54 = vld [vmem:[#allocation2 + $0x12] ss:$3 sm:$0xf] }
 0x16e   :  { %v1023_v58 = vmax.f32 %v1020_v42, %v1022_v54 }
 0x170   :  { %v1031_v2 = vadd.f32 %v1067_v6, %v1023_v58 }
 0x172   :  { %1074 = vst [vmem:[%s2412_s5 + $0x4] sm:$0xf] %v1031_v2  ;;  %v1034_v20 = vsel %vm68_vm5, %v1031_v2, 0.0  ;;  %v1042_v37 = vmul.f32 %v1031_v2, %v1031_v2 }
 0x173   :  { %v1035_v48 = vrot.slane %v1034_v20, 4 }
 0x174   :  { %v1043_v4 = vsel %vm68_vm5, %v1042_v37, 0.0 }
 0x175   :  { %v1036_v27 = vadd.f32 %v1035_v48, %v1034_v20  ;;  %v1044_v49 = vrot.slane %v1043_v4, 4 }
 0x177   :  { %v1037_v28 = vrot.slane %v1036_v27, 2  ;;  %v1045_v46 = vadd.f32 %v1044_v49, %v1043_v4 }
 0x179   :  { %v1038_v55 = vadd.f32 %v1037_v28, %v1036_v27  ;;  %v1046_v40 = vrot.slane %v1045_v46, 2 }
 0x17b   :  { %v1039_v9 = vrot.slane %v1038_v55, 1  ;;  %v1047_v31 = vadd.f32 %v1046_v40, %v1045_v46 }
 0x17d   :  { %v1040_v11 = vadd.f32 %v1039_v9, %v1038_v55  ;;  %v1048_v59 = vrot.slane %v1047_v31, 1 }
 0x17f   :  { %v1041_v6 = vadd.f32 %v1040_v11, %v527_v33  ;;  %v1049_v18 = vadd.f32 %v1048_v59, %v1047_v31 }
 0x181   :  { %v1050_v57 = vadd.f32 %v1049_v18, %v536_v36 }
 0x183   :  { %v1052_v47 = vsel %vm1051_vm6, %v1041_v6, %v1050_v57 }
 0x184   :  { %v1053_v35 = vsel %vm83_vm4, %v1052_v47, 0.0 }
 0x185   :  { %1054 = vst [vmem:[%s2413_s6] sm:$0xff] %v1053_v35 }

// kernel: temporal_replay_convolution.2
= control target key start
LH: loop header
LB: loop body
LE: loop exit
PB: predicated region body
PF: predicated region fallthrough
CT: control target
= control target key end

     0   :  { %10 = vsyncpa [#allocation4], 0  ;;  %s2334_s15 = smov [#allocation3]   ;;  %s2944_s0 = inlined_call_operand.vmem [shape: f32[2,64,128], index: 0, kind: input, shape index: {}]   ;;  %s2945_s1 = inlined_call_operand.hbm [shape: f32[896,128], index: 1, kind: input, shape index: {}]   ;;  %s2946_s2 = inlined_call_operand.vmem [shape: f32[1,128], index: 2, kind: input, shape index: {}]   ;;  %s2947_s3 = inlined_call_operand.vmem [shape: f32[2,19,128], index: 3, kind: output, shape index: {0}]   ;;  %s2948_s4 = inlined_call_operand.vmem [shape: f32[1,8,128], index: 4, kind: output, shape index: {1}]  }
   0x1   :  { %s18_s16 = sshll.u32 %s2334_s15, 4  ;;  %s2310_s19 = scalar_lea.hbm %s2945_s1, 14336  ;;  %s19_s16 = int_to_ptr.vmem [resolvable:$true] %s18_s16 }
   0x2   :  { %p2311_p0 = scmp.ne.s32.totalorder %s2945_s1, %s2310_s19  ;;  %p2314_p1 = scmp.lt.u32.totalorder %s2310_s19, %s2945_s1 }
   0x4   :  { %p2316_p2 = pnand %p2314_p1, %p2311_p0 }
   0x6   :  { %2319 = shalt.err (!%p2316_p2)
}
   0x7   :  { %s2320_s24 = scalar_lea.vmem %s19_s16, 14336  ;;  %p2325_p4 = scmp.lt.s32.totalorder %s19_s16, %s19_s16 }
   0x8   :  { %p2321_p3 = scmp.ne.s32.totalorder %s19_s16, %s2320_s24  ;;  %p2326_p5 = scmp.lt.s32.totalorder %s2320_s24, %s2320_s24 }
   0xa   :  { %p2327_p6 = por %p2326_p5, %p2325_p4 }
   0xc   :  { %p2328_p7 = pnand %p2327_p6, %p2321_p3 }
   0xe   :  { %2331 = shalt.err (!%p2328_p7)
}
   0xf   :  { %s2335_s25 = smov 128   ;;  %s2336_s26 = smov 8  }
  0x10   :  { %24 = dma.hbm_to_vmem [thread:$0]  %s2945_s1, 14336, %s19_s16, [#allocation4], %s2335_s25, %s2335_s25, %s2336_s26  }
  0x11   :  { %2332 = dma.done.wait [#allocation4], 14336  }
  0x12   :  { %2333 = vsyncadd [#allocation4], 4294952960  ;;  %v206_v0 = vld [vmem:[#allocation3 + $0x80] sm:$0xff]  ;;  %v207_v1 = vld [vmem:[#allocation3 + $0x88] sm:$0xff]  ;;  %vm46_vm0 = vcmask 1046528   ;;  %vm94_vm1 = vcmask 1044480  }
  0x13   :  { %v238_v2 = vld [vmem:[#allocation3 + $0x180] sm:$0xff]  ;;  %v2374_v3 = vpack.c.bf16 %v207_v1, %v206_v0  ;;  %v239_v4 = vld [vmem:[#allocation3 + $0x188] sm:$0xff]  ;;  %v208_v11 = vld [vmem:[#allocation3 + $0x90] sm:$0xff]  ;;  %vm70_vm2 = vcmask 1045504   ;;  %vm142_vm3 = vcmask 1042432   ;;  %vm166_vm4 = vcmask 1041408  }
  0x14   :  { %v190_v5 = vld [vmem:[#allocation3] sm:$0xff]  ;;  %v191_v6 = vld [vmem:[#allocation3 + $0x8] sm:$0xff]  ;;  %v2376_v7 = vpack.c.bf16 %v239_v4, %v238_v2  ;;  %v209_v13 = vld [vmem:[#allocation3 + $0x98] sm:$0xff]  ;;  %vm118_vm5 = vcmask 1043456   ;;  %vm1545_vm6 = vcmask 1040384  }
  0x15   :  { %v2378_v8 = vpack.c.bf16 %v191_v6, %v190_v5  ;;  %v222_v9 = vld [vmem:[#allocation3 + $0x100] sm:$0xff]  ;;  %v223_v10 = vld [vmem:[#allocation3 + $0x108] sm:$0xff]  ;;  %2052 = vmatprep.subr.bf16.mxu0 %v2374_v3  ;;  %v240_v14 = vld [vmem:[#allocation3 + $0x190] sm:$0xff]  ;;  %v2385_v16 = vpack.c.bf16 %v209_v13, %v208_v11 }
  0x16   :  { %v2381_v12 = vpack.c.bf16 %v223_v10, %v222_v9  ;;  %v241_v15 = vld [vmem:[#allocation3 + $0x198] sm:$0xff]  ;;  %2084 = vmatprep.subr.bf16.mxu1 %v2376_v7  ;;  %v192_v18 = vld [vmem:[#allocation3 + $0x10] sm:$0xff]  ;;  %v210_v23 = vld [vmem:[#allocation3 + $0xa0] sm:$0xff] }
  0x17   :  { %2054 = vmatpush3.bf16.msra.mxu0 %v2378_v8  ;;  %v2387_v17 = vpack.c.bf16 %v241_v15, %v240_v14  ;;  %v193_v19 = vld [vmem:[#allocation3 + $0x18] sm:$0xff]  ;;  %v224_v20 = vld [vmem:[#allocation3 + $0x110] sm:$0xff]  ;;  %v211_v24 = vld [vmem:[#allocation3 + $0xa8] sm:$0xff] }
  0x18   :  { %2086 = vmatpush3.bf16.msra.mxu1 %v2381_v12  ;;  %v2390_v21 = vpack.c.bf16 %v193_v19, %v192_v18  ;;  %v225_v22 = vld [vmem:[#allocation3 + $0x118] sm:$0xff]  ;;  %2056 = vmatprep.subr.bf16.mxu0 %v2385_v16  ;;  %v2396_v26 = vpack.c.bf16 %v211_v24, %v210_v23  ;;  %v242_v27 = vld [vmem:[#allocation3 + $0x1a0] sm:$0xff]  ;;  %v243_v28 = vld [vmem:[#allocation3 + $0x1a8] sm:$0xff] }
  0x19   :  { %2088 = vmatprep.subr.bf16.mxu1 %v2387_v17  ;;  %v2394_v25 = vpack.c.bf16 %v225_v22, %v224_v20  ;;  %v194_v29 = vld [vmem:[#allocation3 + $0x20] sm:$0xff]  ;;  %v2398_v30 = vpack.c.bf16 %v243_v28, %v242_v27  ;;  %v195_v31 = vld [vmem:[#allocation3 + $0x28] sm:$0xff]  ;;  %v212_v35 = vld [vmem:[#allocation3 + $0xb0] sm:$0xff] }
  0x1a   :  { %v226_v32 = vld [vmem:[#allocation3 + $0x120] sm:$0xff]  ;;  %v227_v33 = vld [vmem:[#allocation3 + $0x128] sm:$0xff]  ;;  %v2401_v34 = vpack.c.bf16 %v195_v31, %v194_v29  ;;  %v213_v36 = vld [vmem:[#allocation3 + $0xb8] sm:$0xff] }
  0x1b   :  { %2058 = vmatpush3.bf16.msra.mxu0 %v2390_v21  ;;  %v244_v37 = vld [vmem:[#allocation3 + $0x1b0] sm:$0xff]  ;;  %v2405_v38 = vpack.c.bf16 %v227_v33, %v226_v32  ;;  %v2407_v39 = vpack.c.bf16 %v213_v36, %v212_v35  ;;  %v245_v40 = vld [vmem:[#allocation3 + $0x1b8] sm:$0xff]  ;;  %v214_v46 = vld [vmem:[#allocation3 + $0xc0] sm:$0xff] }
  0x1c   :  { %2090 = vmatpush3.bf16.msra.mxu1 %v2394_v25  ;;  %2060 = vmatprep.subr.bf16.mxu0 %v2396_v26  ;;  %v196_v41 = vld [vmem:[#allocation3 + $0x30] sm:$0xff]  ;;  %v197_v42 = vld [vmem:[#allocation3 + $0x38] sm:$0xff]  ;;  %v2410_v43 = vpack.c.bf16 %v245_v40, %v244_v37  ;;  %v215_v47 = vld [vmem:[#allocation3 + $0xc8] sm:$0xff] }
  0x1d   :  { %2092 = vmatprep.subr.bf16.mxu1 %v2398_v30  ;;  %v228_v44 = vld [vmem:[#allocation3 + $0x130] sm:$0xff]  ;;  %v229_v45 = vld [vmem:[#allocation3 + $0x138] sm:$0xff]  ;;  %v246_v48 = vld [vmem:[#allocation3 + $0x1c0] sm:$0xff]  ;;  %v2413_v50 = vpack.c.bf16 %v197_v42, %v196_v41  ;;  %v2419_v52 = vpack.c.bf16 %v215_v47, %v214_v46 }
  0x1e   :  { %v247_v49 = vld [vmem:[#allocation3 + $0x1c8] sm:$0xff]  ;;  %v2417_v51 = vpack.c.bf16 %v229_v45, %v228_v44  ;;  %v198_v53 = vld [vmem:[#allocation3 + $0x40] sm:$0xff]  ;;  %v216_v58 = vld [vmem:[#allocation3 + $0xd0] sm:$0xff] }
  0x1f   :  { %2062 = vmatpush3.bf16.msra.mxu0 %v2401_v34  ;;  %v199_v54 = vld [vmem:[#allocation3 + $0x48] sm:$0xff]  ;;  %v230_v55 = vld [vmem:[#allocation3 + $0x140] sm:$0xff]  ;;  %v2422_v56 = vpack.c.bf16 %v247_v49, %v246_v48  ;;  %v217_v59 = vld [vmem:[#allocation3 + $0xd8] sm:$0xff] }
  0x20   :  { %2094 = vmatpush3.bf16.msra.mxu1 %v2405_v38  ;;  %2064 = vmatprep.subr.bf16.mxu0 %v2407_v39  ;;  %v231_v57 = vld [vmem:[#allocation3 + $0x148] sm:$0xff]  ;;  %v248_v60 = vld [vmem:[#allocation3 + $0x1d0] sm:$0xff]  ;;  %v249_v61 = vld [vmem:[#allocation3 + $0x1d8] sm:$0xff]  ;;  %v2425_v62 = vpack.c.bf16 %v199_v54, %v198_v53  ;;  %v2431_v0 = vpack.c.bf16 %v217_v59, %v216_v58 }
  0x21   :  { %2096 = vmatprep.subr.bf16.mxu1 %v2410_v43  ;;  %v2429_v63 = vpack.c.bf16 %v231_v57, %v230_v55  ;;  %v200_v1 = vld [vmem:[#allocation3 + $0x50] sm:$0xff]  ;;  %v201_v2 = vld [vmem:[#allocation3 + $0x58] sm:$0xff]  ;;  %v2434_v5 = vpack.c.bf16 %v249_v61, %v248_v60  ;;  %v218_v9 = vld [vmem:[#allocation3 + $0xe0] sm:$0xff] }
  0x22   :  { %v232_v4 = vld [vmem:[#allocation3 + $0x150] sm:$0xff]  ;;  %v233_v6 = vld [vmem:[#allocation3 + $0x158] sm:$0xff]  ;;  %v219_v10 = vld [vmem:[#allocation3 + $0xe8] sm:$0xff]  ;;  %v2437_v14 = vpack.c.bf16 %v201_v2, %v200_v1 }
  0x23   :  { %2066 = vmatpush3.bf16.msra.mxu0 %v2413_v50  ;;  %v250_v11 = vld [vmem:[#allocation3 + $0x1e0] sm:$0xff]  ;;  %v251_v13 = vld [vmem:[#allocation3 + $0x1e8] sm:$0xff]  ;;  %v2441_v19 = vpack.c.bf16 %v233_v6, %v232_v4  ;;  %v2443_v20 = vpack.c.bf16 %v219_v10, %v218_v9  ;;  %v220_v29 = vld [vmem:[#allocation3 + $0xf0] sm:$0xff] }
  0x24   :  { %2098 = vmatpush3.bf16.msra.mxu1 %v2417_v51  ;;  %2068 = vmatprep.subr.bf16.mxu0 %v2419_v52  ;;  %v202_v15 = vld [vmem:[#allocation3 + $0x60] sm:$0xff]  ;;  %v203_v18 = vld [vmem:[#allocation3 + $0x68] sm:$0xff]  ;;  %v2456_v27 = vpack.c.bf16 %v251_v13, %v250_v11  ;;  %v221_v31 = vld [vmem:[#allocation3 + $0xf8] sm:$0xff] }
  0x25   :  { %2100 = vmatprep.subr.bf16.mxu1 %v2422_v56  ;;  %v234_v22 = vld [vmem:[#allocation3 + $0x160] sm:$0xff]  ;;  %v2453_v24 = vld [vmem:[%s2944_s0 + $0x8] sm:$0xff]  ;;  %v252_v36 = vld [vmem:[#allocation3 + $0x1f0] sm:$0xff]  ;;  %v2463_v41 = vpack.c.bf16 %v203_v18, %v202_v15  ;;  %v2470_v45 = vpack.c.bf16 %v221_v31, %v220_v29 }
  0x26   :  { %v2448_v23 = vld [vmem:[%s2944_s0] sm:$0xff]  ;;  %v235_v28 = vld [vmem:[#allocation3 + $0x168] sm:$0xff]  ;;  %v48_v33 = vrot.slane %v2453_v24, 1  ;;  %v253_v37 = vld [vmem:[#allocation3 + $0x1f8] sm:$0xff]  ;;  %v96_v40 = vrot.slane %v2453_v24, 3  ;;  %v72_v4 = vrot.slane %v2453_v24, 2 }
  0x27   :  { %2070 = vmatpush3.bf16.msra.mxu0 %v2425_v62  ;;  %v47_v32 = vrot.slane %v2448_v23, 1  ;;  %v95_v35 = vrot.slane %v2448_v23, 3  ;;  %v2468_v44 = vpack.c.bf16 %v235_v28, %v234_v22  ;;  %v204_v46 = vld [vmem:[#allocation3 + $0x70] sm:$0xff]  ;;  %v205_v47 = vld [vmem:[#allocation3 + $0x78] sm:$0xff]  ;;  %v2474_v53 = vpack.c.bf16 %v253_v37, %v252_v36  ;;  %v270_v55 = vld [vmem:[#allocation3 + $0x280] sm:$0xff] }
  0x28   :  { %2102 = vmatpush3.bf16.msra.mxu1 %v2429_v63  ;;  %2072 = vmatprep.subr.bf16.mxu0 %v2431_v0  ;;  %v236_v48 = vld [vmem:[#allocation3 + $0x170] sm:$0xff]  ;;  %v237_v54 = vld [vmem:[#allocation3 + $0x178] sm:$0xff]  ;;  %v271_v57 = vld [vmem:[#allocation3 + $0x288] sm:$0xff]  ;;  %v2482_v61 = vpack.c.bf16 %v205_v47, %v204_v46  ;;  %v71_v2 = vrot.slane %v2448_v23, 2 }
  0x29   :  { %2104 = vmatprep.subr.bf16.mxu1 %v2434_v5  ;;  %v49_v42 = vsel %vm46_vm0, %v47_v32, %v48_v33  ;;  %v97_v49 = vsel %vm94_vm1, %v95_v35, %v96_v40  ;;  %v286_v58 = vld [vmem:[#allocation3 + $0x300] sm:$0xff]  ;;  %v287_v59 = vld [vmem:[#allocation3 + $0x308] sm:$0xff]  ;;  %v2479_v60 = vld [vmem:[%s2944_s0 + $0x10] sm:$0xff]  ;;  %v2486_v1 = vpack.c.bf16 %v237_v54, %v236_v48  ;;  %v2490_v6 = vpack.c.bf16 %v271_v57, %v270_v55 }
  0x2a   :  { %366 = vmatprep.mubr.f32.mxu0 %v49_v42  ;;  %471 = vmatprep.mubr.f32.mxu1 %v97_v49  ;;  %v254_v9 = vld [vmem:[#allocation3 + $0x200] sm:$0xff]  ;;  %v255_v10 = vld [vmem:[#allocation3 + $0x208] sm:$0xff]  ;;  %v2493_v11 = vpack.c.bf16 %v287_v59, %v286_v58  ;;  %v50_v13 = vrot.slane %v2479_v60, 1  ;;  %v98_v15 = vrot.slane %v2479_v60, 3  ;;  %v272_v18 = vld [vmem:[#allocation3 + $0x290] sm:$0xff]  ;;  %v73_v35 = vsel %vm70_vm2, %v71_v2, %v72_v4 }
  0x2b   :  { %2074 = vmatpush3.bf16.msra.mxu0 %v2437_v14  ;;  %2969 = vst [vmem:[#allocation6_spill] sm:$0xff] %v2486_v1  ;;  %2970 = vst [vmem:[#allocation7_spill] sm:$0xff] %v2490_v6  ;;  %v273_v22 = vld [vmem:[#allocation3 + $0x298] sm:$0xff]  ;;  %v2503_v29 = vpack.c.bf16 %v255_v10, %v254_v9  ;;  %v288_v31 = vld [vmem:[#allocation3 + $0x310] sm:$0xff]  ;;  %v74_v36 = vrot.slane %v2479_v60, 2 }
  0x2c   :  { %2106 = vmatpush3.bf16.msra.mxu1 %v2441_v19  ;;  %2076 = vmatprep.subr.bf16.mxu0 %v2443_v20  ;;  %2971 = vst [vmem:[#allocation8_spill] sm:$0xff] %v2493_v11  ;;  %v2500_v28 = vld [vmem:[%s2944_s0 + $0x18] sm:$0xff]  ;;  %v256_v37 = vld [vmem:[#allocation3 + $0x210] sm:$0xff]  ;;  %v51_v46 = vsel %vm46_vm0, %v48_v33, %v50_v13  ;;  %v2511_v47 = vpack.c.bf16 %v273_v22, %v272_v18  ;;  %v274_v57 = vld [vmem:[#allocation3 + $0x2a0] sm:$0xff] }
  0x2d   :  { %2108 = vmatprep.subr.bf16.mxu1 %v2456_v27  ;;  %2972 = vst [vmem:[#allocation9_spill] sm:$0xff] %v2503_v29  ;;  %v289_v32 = vld [vmem:[#allocation3 + $0x318] sm:$0xff]  ;;  %v52_v48 = vrot.slane %v2500_v28, 1  ;;  %v99_v49 = vsel %vm94_vm1, %v96_v40, %v98_v15  ;;  %v100_v55 = vrot.slane %v2500_v28, 3  ;;  %v275_v58 = vld [vmem:[#allocation3 + $0x2a8] sm:$0xff]  ;;  %v2522_v59 = vld [vmem:[%s2944_s0 + $0x20] sm:$0xff]  ;;  %v75_v40 = vsel %vm70_vm2, %v72_v4, %v74_v36 }
  0x2e   :  { %v257_v42 = vld [vmem:[#allocation3 + $0x218] sm:$0xff]  ;;  %2973 = vst [vmem:[#allocation10_spill] sm:$0xff] %v2511_v47  ;;  %v2516_v54 = vpack.c.bf16 %v289_v32, %v288_v31  ;;  %v290_v2 = vld [vmem:[#allocation3 + $0x320] sm:$0xff]  ;;  %v291_v9 = vld [vmem:[#allocation3 + $0x328] sm:$0xff]  ;;  %v76_v10 = vrot.slane %v2500_v28, 2  ;;  %v2532_v32 = vpack.c.bf16 %v275_v58, %v274_v57 }
  0x2f   :  { %2078 = vmatpush3.bf16.msra.mxu0 %v2463_v41  ;;  %v2525_v33 = vpack.c.bf16 %v257_v42, %v256_v37  ;;  %v258_v18 = vld [vmem:[#allocation3 + $0x220] sm:$0xff]  ;;  %v259_v22 = vld [vmem:[#allocation3 + $0x228] sm:$0xff]  ;;  %v53_v31 = vsel %vm46_vm0, %v50_v13, %v52_v48  ;;  %v101_v37 = vsel %vm94_vm1, %v98_v15, %v100_v55  ;;  %v2538_v4 = vpack.c.bf16 %v291_v9, %v290_v2  ;;  %v292_v58 = vld [vmem:[#allocation3 + $0x330] sm:$0xff] }
  0x30   :  { %2110 = vmatpush3.bf16.msra.mxu1 %v2468_v44  ;;  %2080 = vmatprep.subr.bf16.mxu0 %v2470_v45  ;;  %2974 = vst [vmem:[#allocation11_spill] sm:$0xff] %v2516_v54  ;;  %2976 = vst [vmem:[#allocation13_spill] sm:$0xff] %v2532_v32  ;;  %v102_v42 = vrot.slane %v2522_v59, 3  ;;  %v2544_v13 = vld [vmem:[%s2944_s0 + $0x28] sm:$0xff]  ;;  %v2547_v57 = vpack.c.bf16 %v259_v22, %v258_v18  ;;  %v77_v15 = vsel %vm70_vm2, %v74_v36, %v76_v10  ;;  %v260_v9 = vld [vmem:[#allocation3 + $0x230] sm:$0xff] }
  0x31   :  { %2112 = vmatprep.subr.bf16.mxu1 %v2474_v53  ;;  %2975 = vst [vmem:[#allocation12_spill] sm:$0xff] %v2525_v33  ;;  %2977 = vst [vmem:[#allocation14_spill] sm:$0xff] %v2538_v4  ;;  %v78_v2 = vrot.slane %v2522_v59, 2  ;;  %v56_v18 = vrot.slane %v2544_v13, 1 }
  0x32   :  { %2978 = vst [vmem:[#allocation15_spill] sm:$0xff] %v2547_v57  ;;  %v103_v22 = vsel %vm94_vm1, %v100_v55, %v102_v42  ;;  %v80_v55 = vrot.slane %v2544_v13, 2 }
  0x33   :  { %2082 = vmatpush3.bf16.msra.mxu0 %v2482_v61 }
  0x34   :  { %2114 = vmatpush3.bf16.msra.mxu1 %v2486_v1  ;;  %2116 = vmatprep.subr.bf16.mxu0 %v2490_v6 }
  0x35   :  { %2148 = vmatprep.subr.bf16.mxu1 %v2493_v11 }
  0x36   :  { %367 = vmatmul.mubr.f32.vlgmr.msra.gmra.mrb[0].mxu0 %v2448_v23 }
  0x37   :  { %472 = vmatmul.mubr.f32.vlgmr.msra.gmra.mrb[0].mxu1 %v73_v35  ;;  %2118 = vmatpush3.bf16.msra.mxu0 %v2503_v29  ;;  %v54_v35 = vrot.slane %v2522_v59, 1  ;;  %v261_v29 = vld [vmem:[#allocation3 + $0x238] sm:$0xff] }
  0x38   :  { %2150 = vmatpush3.bf16.msra.mxu1 %v2493_v11  ;;  %371 = vmatprep.mubr.f32.mxu0 %v51_v46  ;;  %v276_v46 = vld [vmem:[#allocation3 + $0x2b0] sm:$0xff] }
  0x39   :  { %476 = vmatprep.mubr.f32.mxu1 %v99_v49  ;;  %2120 = vmatprep.subr.bf16.mxu0 %v2511_v47  ;;  %v277_v49 = vld [vmem:[#allocation3 + $0x2b8] sm:$0xff] }
  0x3a   :  { %372 = vmatmul.mubr.f32.gmra.mrb[2].mxu0 %v2453_v24  ;;  %2152 = vmatprep.subr.bf16.mxu1 %v2516_v54  ;;  %v293_v47 = vld [vmem:[#allocation3 + $0x338] sm:$0xff]  ;;  %v2554_v11 = vpack.c.bf16 %v277_v49, %v276_v46  ;;  %v2569_v46 = vpack.c.bf16 %v261_v29, %v260_v9  ;;  %v294_v49 = vld [vmem:[#allocation3 + $0x340] sm:$0xff] }
  0x3b   :  { %477 = vmatmul.mubr.f32.gmra.mrb[2].mxu1 %v75_v40  ;;  %2122 = vmatpush3.bf16.msra.mxu0 %v2525_v33  ;;  %v55_v40 = vsel %vm46_vm0, %v52_v48, %v54_v35  ;;  %v2560_v36 = vpack.c.bf16 %v293_v47, %v292_v58  ;;  %v278_v33 = vld [vmem:[#allocation3 + $0x2c0] sm:$0xff]  ;;  %v2566_v48 = vld [vmem:[%s2944_s0 + $0x30] sm:$0xff]  ;;  %v79_v47 = vsel %vm70_vm2, %v76_v10, %v78_v2 }
  0x3c   :  { %2154 = vmatpush3.bf16.msra.mxu1 %v2516_v54  ;;  %376 = vmatprep.mubr.f32.mxu0 %v53_v31  ;;  %2979 = vst [vmem:[#allocation16_spill] sm:$0xff] %v2554_v11  ;;  %v104_v31 = vrot.slane %v2544_v13, 3  ;;  %2981 = vst [vmem:[#allocation18_spill] sm:$0xff] %v2569_v46  ;;  %v262_v58 = vld [vmem:[#allocation3 + $0x240] sm:$0xff]  ;;  %v263_v54 = vld [vmem:[#allocation3 + $0x248] sm:$0xff]  ;;  %v58_v29 = vrot.slane %v2566_v48, 1 }
  0x3d   :  { %481 = vmatprep.mubr.f32.mxu1 %v101_v37  ;;  %2124 = vmatprep.subr.bf16.mxu0 %v2532_v32  ;;  %2980 = vst [vmem:[#allocation17_spill] sm:$0xff] %v2560_v36  ;;  %v279_v37 = vld [vmem:[#allocation3 + $0x2c8] sm:$0xff] }
  0x3e   :  { %377 = vmatmul.mubr.f32.gmra.mrb[4].mxu0 %v2479_v60  ;;  %2156 = vmatprep.subr.bf16.mxu1 %v2538_v4  ;;  %v295_v32 = vld [vmem:[#allocation3 + $0x348] sm:$0xff]  ;;  %v2576_v6 = vpack.c.bf16 %v279_v37, %v278_v33  ;;  %v105_v9 = vsel %vm94_vm1, %v102_v42, %v104_v31  ;;  %v2591_v33 = vpack.c.bf16 %v263_v54, %v262_v58  ;;  %v296_v37 = vld [vmem:[#allocation3 + $0x350] sm:$0xff]  ;;  %v82_v42 = vrot.slane %v2566_v48, 2 }
  0x3f   :  { %482 = vmatmul.mubr.f32.gmra.mrb[4].mxu1 %v77_v15  ;;  %2126 = vmatpush3.bf16.msra.mxu0 %v2547_v57  ;;  %v57_v15 = vsel %vm46_vm0, %v54_v35, %v56_v18  ;;  %v2582_v10 = vpack.c.bf16 %v295_v32, %v294_v49  ;;  %v280_v57 = vld [vmem:[#allocation3 + $0x2d0] sm:$0xff]  ;;  %v2588_v35 = vld [vmem:[%s2944_s0 + $0x38] sm:$0xff]  ;;  %v81_v32 = vsel %vm70_vm2, %v78_v2, %v80_v55 }
  0x40   :  { %2158 = vmatpush3.bf16.msra.mxu1 %v2538_v4  ;;  %381 = vmatprep.mubr.f32.mxu0 %v55_v40  ;;  %2982 = vst [vmem:[#allocation19_spill] sm:$0xff] %v2576_v6  ;;  %v106_v40 = vrot.slane %v2566_v48, 3  ;;  %2983 = vst [vmem:[#allocation20_spill] sm:$0xff] %v2591_v33  ;;  %v264_v49 = vld [vmem:[#allocation3 + $0x250] sm:$0xff]  ;;  %v265_v4 = vld [vmem:[#allocation3 + $0x258] sm:$0xff]  ;;  %v60_v54 = vrot.slane %v2588_v35, 1 }
  0x41   :  { %486 = vmatprep.mubr.f32.mxu1 %v103_v22  ;;  %2128 = vmatprep.subr.bf16.mxu0 %v2554_v11  ;;  %v281_v22 = vld [vmem:[#allocation3 + $0x2d8] sm:$0xff] }
  0x42   :  { %382 = vmatmul.mubr.f32.gmra.mrb[6].mxu0 %v2500_v28  ;;  %2160 = vmatprep.subr.bf16.mxu1 %v2560_v36  ;;  %v297_v11 = vld [vmem:[#allocation3 + $0x358] sm:$0xff]  ;;  %v2598_v1 = vpack.c.bf16 %v281_v22, %v280_v57  ;;  %v107_v58 = vsel %vm94_vm1, %v104_v31, %v106_v40  ;;  %v298_v57 = vld [vmem:[#allocation3 + $0x360] sm:$0xff]  ;;  %v299_v22 = vld [vmem:[#allocation3 + $0x368] sm:$0xff]  ;;  %v84_v31 = vrot.slane %v2588_v35, 2 }
  0x43   :  { %487 = vmatmul.mubr.f32.gmra.mrb[6].mxu1 %v79_v47  ;;  %2130 = vmatpush3.bf16.msra.mxu0 %v2569_v46  ;;  %v59_v47 = vsel %vm46_vm0, %v56_v18, %v58_v29  ;;  %v2604_v2 = vpack.c.bf16 %v297_v11, %v296_v37  ;;  %v282_v46 = vld [vmem:[#allocation3 + $0x2e0] sm:$0xff]  ;;  %v2608_v18 = vpack.c.bf16 %v265_v4, %v264_v49  ;;  %v267_v37 = vld [vmem:[#allocation3 + $0x268] sm:$0xff] }
  0x44   :  { %2162 = vmatpush3.bf16.msra.mxu1 %v2560_v36  ;;  %386 = vmatprep.mubr.f32.mxu0 %v57_v15  ;;  %2984 = vst [vmem:[#allocation21_spill] sm:$0xff] %v2598_v1  ;;  %v108_v15 = vrot.slane %v2588_v35, 3  ;;  %v266_v11 = vld [vmem:[#allocation3 + $0x260] sm:$0xff]  ;;  %v2620_v49 = vpack.c.bf16 %v299_v22, %v298_v57  ;;  %v144_v57 = vrot.slane %v2453_v24, 5 }
  0x45   :  { %491 = vmatprep.mubr.f32.mxu1 %v105_v9  ;;  %2132 = vmatprep.subr.bf16.mxu0 %v2576_v6  ;;  %v283_v9 = vld [vmem:[#allocation3 + $0x2e8] sm:$0xff]  ;;  %v83_v6 = vsel %vm70_vm2, %v80_v55, %v82_v42  ;;  %v284_v55 = vld [vmem:[#allocation3 + $0x2f0] sm:$0xff] }
  0x46   :  { %387 = vmatmul.mubr.f32.gmra.mrb[8].mxu0 %v2522_v59  ;;  %2164 = vmatprep.subr.bf16.mxu1 %v2582_v10  ;;  %v2615_v36 = vpack.c.bf16 %v283_v9, %v282_v46  ;;  %v109_v4 = vsel %vm94_vm1, %v106_v40, %v108_v15  ;;  %v85_v46 = vsel %vm70_vm2, %v82_v42, %v84_v31  ;;  %v269_v9 = vld [vmem:[#allocation3 + $0x278] sm:$0xff]  ;;  %v167_v42 = vrot.slane %v2448_v23, 6 }
  0x47   :  { %492 = vmatmul.mubr.f32.gmra.mrb[8].mxu1 %v81_v32  ;;  %2134 = vmatpush3.bf16.msra.mxu0 %v2591_v33  ;;  %v61_v32 = vsel %vm46_vm0, %v58_v29, %v60_v54  ;;  %v301_v33 = vld [vmem:[#allocation3 + $0x378] sm:$0xff]  ;;  %v268_v29 = vld [vmem:[#allocation3 + $0x270] sm:$0xff] }
  0x48   :  { %2166 = vmatpush3.bf16.msra.mxu1 %v2582_v10  ;;  %391 = vmatprep.mubr.f32.mxu0 %v59_v47  ;;  %v285_v47 = vld [vmem:[#allocation3 + $0x2f8] sm:$0xff] }
  0x49   :  { %496 = vmatprep.mubr.f32.mxu1 %v107_v58  ;;  %2136 = vmatprep.subr.bf16.mxu0 %v2598_v1  ;;  %v2623_v58 = vpack.c.bf16 %v267_v37, %v266_v11  ;;  %v300_v1 = vld [vmem:[#allocation3 + $0x370] sm:$0xff]  ;;  %v2628_v40 = vpack.c.bf16 %v285_v47, %v284_v55  ;;  %v168_v11 = vrot.slane %v2453_v24, 6  ;;  %v2639_v37 = vpack.c.bf16 %v269_v9, %v268_v29 }
  0x4a   :  { %392 = vmatmul.mubr.f32.gmra.mrb[10].mxu0 %v2544_v13  ;;  %2168 = vmatprep.subr.bf16.mxu1 %v2604_v2  ;;  %v2634_v22 = vpack.c.bf16 %v301_v33, %v300_v1  ;;  %v170_v1 = vrot.slane %v2479_v60, 6  ;;  %v146_v55 = vrot.slane %v2479_v60, 5  ;;  %v174_v29 = vrot.slane %v2522_v59, 6 }
  0x4b   :  { %497 = vmatmul.mubr.f32.gmra.mrb[10].mxu1 %v83_v6  ;;  %2138 = vmatpush3.bf16.msra.mxu0 %v2608_v18  ;;  %v143_v6 = vrot.slane %v2448_v23, 5  ;;  %v124_v9 = vrot.slane %v2500_v28, 4 }
  0x4c   :  { %2170 = vmatpush3.bf16.msra.mxu1 %v2604_v2  ;;  %396 = vmatprep.mubr.f32.mxu0 %v61_v32  ;;  %v119_v32 = vrot.slane %v2448_v23, 4  ;;  %v169_v23 = vsel %vm166_vm4, %v167_v42, %v168_v11  ;;  %v171_v47 = vsel %vm166_vm4, %v168_v11, %v170_v1  ;;  %v176_v42 = vrot.slane %v2544_v13, 6 }
  0x4d   :  { %501 = vmatprep.mubr.f32.mxu1 %v109_v4  ;;  %2140 = vmatprep.subr.bf16.mxu0 %v2615_v36  ;;  %v120_v4 = vrot.slane %v2453_v24, 4  ;;  %v145_v33 = vsel %vm142_vm3, %v143_v6, %v144_v57 }
  0x4e   :  { %397 = vmatmul.mubr.f32.gmra.mrb[12].mxu0 %v2566_v48  ;;  %2172 = vmatprep.subr.bf16.mxu1 %v2620_v49  ;;  %v177_v11 = vsel %vm166_vm4, %v174_v29, %v176_v42 }
  0x4f   :  { %502 = vmatmul.mubr.f32.gmra.mrb[12].mxu1 %v85_v46  ;;  %2142 = vmatpush3.bf16.msra.mxu0 %v2623_v58  ;;  %v121_v24 = vsel %vm118_vm5, %v119_v32, %v120_v4  ;;  %v148_v46 = vrot.slane %v2500_v28, 5  ;;  %v180_v32 = vrot.slane %v2588_v35, 6 }
  0x50   :  { %2174 = vmatpush3.bf16.msra.mxu1 %v2620_v49  ;;  %401 = vmatprep.mubr.f32.mxu0 %v60_v54  ;;  %v122_v54 = vrot.slane %v2479_v60, 4 }
  0x51   :  { %506 = vmatprep.mubr.f32.mxu1 %v108_v15  ;;  %2144 = vmatprep.subr.bf16.mxu0 %v2628_v40  ;;  %v172_v15 = vrot.slane %v2500_v28, 6 }
  0x52   :  { %402 = vmatmul.mubr.f32.gmra.mrb[14].mxu0 %v2588_v35  ;;  %2176 = vmatprep.subr.bf16.mxu1 %v2634_v22  ;;  %v123_v60 = vsel %vm118_vm5, %v120_v4, %v122_v54  ;;  %v128_v4 = vrot.slane %v2544_v13, 4 }
  0x53   :  { %507 = vmatmul.mubr.f32.gmra.mrb[14].mxu1 %v84_v31  ;;  %2146 = vmatpush3.bf16.msra.mxu0 %v2639_v37  ;;  %v147_v31 = vsel %vm142_vm3, %v144_v57, %v146_v55  ;;  %v173_v6 = vsel %vm166_vm4, %v170_v1, %v172_v15  ;;  %v175_v28 = vsel %vm166_vm4, %v172_v15, %v174_v29  ;;  %v178_v57 = vrot.slane %v2566_v48, 6 }
  0x54   :  { %2178 = vmatpush3.bf16.msra.mxu1 %v2634_v22  ;;  %576 = vmatprep.mubr.f32.mxu0 %v145_v33 }
  0x55   :  { %1995 = vmatprep.mubr.f32.mxu1 %v169_v23  ;;  %2180 = vmatprep.subr.bf16.mxu0 %v2374_v3  ;;  %v149_v3 = vsel %vm142_vm3, %v146_v55, %v148_v46  ;;  %v181_v1 = vsel %vm166_vm4, %v178_v57, %v180_v32  ;;  %v154_v23 = vrot.slane %v2566_v48, 5 }
  0x56   :  { %577 = vmatmul.mubr.f32.vlgmr.msra.gmra.mrb[16].mxu0 %v121_v24  ;;  %2212 = vmatprep.subr.bf16.mxu1 %v2376_v7  ;;  %v150_v7 = vrot.slane %v2522_v59, 5 }
  0x57   :  { %1996 = vmatmul.mubr.f32.vlgmr.msra.gmra.mrb[16].mxu1 %v171_v47  ;;  %2182 = vmatpush3.bf16.msra.mxu0 %v2378_v8  ;;  %v126_v8 = vrot.slane %v2522_v59, 4  ;;  %v2686_v59 = vld [vmem:[%s2944_s0 + $0x40] sm:$0xff] }
  0x58   :  { %2214 = vmatpush3.bf16.msra.mxu1 %v2381_v12  ;;  %581 = vmatprep.mubr.f32.mxu0 %v147_v31  ;;  %v125_v12 = vsel %vm118_vm5, %v122_v54, %v124_v9  ;;  %v852_v33 = vrot.slane %v2686_v59, 3  ;;  %v2987_v54 = vld [vmem:[#allocation8_spill] sm:$0xff] }
  0x59   :  { %2184 = vmatprep.subr.bf16.mxu0 %v2385_v16  ;;  %2216 = vmatprep.subr.bf16.mxu1 %v2387_v17  ;;  %v151_v16 = vsel %vm142_vm3, %v148_v46, %v150_v7  ;;  %v152_v17 = vrot.slane %v2544_v13, 5  ;;  %v130_v13 = vrot.slane %v2566_v48, 4  ;;  %v132_v48 = vrot.slane %v2588_v35, 4  ;;  %v2988_v46 = vld [vmem:[#allocation9_spill] sm:$0xff] }
  0x5a   :  { %582 = vmatmul.mubr.f32.gmra.mrb[18].mxu0 %v123_v60  ;;  %1998 = vmatprep.mubr.f32.mxu1 %v173_v6  ;;  %v2989_v60 = vld [vmem:[#allocation10_spill] sm:$0xff] }
  0x5b   :  { %2186 = vmatpush3.bf16.msra.mxu0 %v2390_v21  ;;  %586 = vmatprep.mubr.f32.mxu0 %v149_v3  ;;  %v2691_v21 = vld [vmem:[%s2944_s0 + $0x48] sm:$0xff] }
  0x5c   :  { %2218 = vmatpush3.bf16.msra.mxu1 %v2394_v25  ;;  %2188 = vmatprep.subr.bf16.mxu0 %v2396_v26  ;;  %v127_v25 = vsel %vm118_vm5, %v124_v9, %v126_v8  ;;  %v179_v26 = vsel %vm166_vm4, %v176_v42, %v178_v57  ;;  %v853_v55 = vrot.slane %v2691_v21, 3 }
  0x5d   :  { %2220 = vmatprep.subr.bf16.mxu1 %v2398_v30  ;;  %1999 = vmatmul.mubr.f32.gmra.mrb[18].mxu1 %v175_v28  ;;  %v153_v30 = vsel %vm142_vm3, %v150_v7, %v152_v17  ;;  %v2990_v7 = vld [vmem:[#allocation11_spill] sm:$0xff]  ;;  %v2991_v28 = vld [vmem:[#allocation12_spill] sm:$0xff] }
  0x5e   :  { %587 = vmatmul.mubr.f32.gmra.mrb[20].mxu0 %v125_v12  ;;  %2001 = vmatprep.mubr.f32.mxu1 %v177_v11  ;;  %v2992_v11 = vld [vmem:[#allocation13_spill] sm:$0xff] }
  0x5f   :  { %2190 = vmatpush3.bf16.msra.mxu0 %v2401_v34  ;;  %591 = vmatprep.mubr.f32.mxu0 %v151_v16  ;;  %v129_v34 = vsel %vm118_vm5, %v126_v8, %v128_v4  ;;  %v2778_v8 = vld [vmem:[%s2944_s0 + $0x68] sm:$0xff] }
  0x60   :  { %2222 = vmatpush3.bf16.msra.mxu1 %v2405_v38  ;;  %2192 = vmatprep.subr.bf16.mxu0 %v2407_v39  ;;  %v854_v38 = vsel %vm94_vm1, %v852_v33, %v853_v55  ;;  %v155_v39 = vsel %vm142_vm3, %v152_v17, %v154_v23  ;;  %v815_v17 = vrot.slane %v2778_v8, 1 }
  0x61   :  { %2224 = vmatprep.subr.bf16.mxu1 %v2410_v43  ;;  %2002 = vmatmul.mubr.f32.gmra.mrb[20].mxu1 %v179_v26  ;;  %v156_v43 = vrot.slane %v2588_v35, 5  ;;  %v2993_v26 = vld [vmem:[#allocation14_spill] sm:$0xff] }
  0x62   :  { %592 = vmatmul.mubr.f32.gmra.mrb[22].mxu0 %v127_v25  ;;  %2004 = vmatprep.mubr.f32.mxu1 %v181_v1  ;;  %v861_v25 = vrot.slane %v2778_v8, 3  ;;  %v2994_v1 = vld [vmem:[#allocation15_spill] sm:$0xff] }
  0x63   :  { %2194 = vmatpush3.bf16.msra.mxu0 %v2413_v50  ;;  %596 = vmatprep.mubr.f32.mxu0 %v153_v30  ;;  %v131_v50 = vsel %vm118_vm5, %v128_v4, %v130_v13  ;;  %v2794_v4 = vld [vmem:[%s2944_s0 + $0x70] sm:$0xff] }
  0x64   :  { %2226 = vmatpush3.bf16.msra.mxu1 %v2417_v51  ;;  %2196 = vmatprep.subr.bf16.mxu0 %v2419_v52  ;;  %v157_v51 = vsel %vm142_vm3, %v154_v23, %v156_v43  ;;  %v133_v52 = vsel %vm118_vm5, %v130_v13, %v132_v48  ;;  %v2995_v30 = vld [vmem:[#allocation16_spill] sm:$0xff]  ;;  %v817_v13 = vrot.slane %v2794_v4, 1 }
  0x65   :  { %2228 = vmatprep.subr.bf16.mxu1 %v2422_v56  ;;  %2005 = vmatmul.mubr.f32.gmra.mrb[22].mxu1 %v180_v32  ;;  %v806_v56 = vrot.slane %v2686_v59, 1 }
  0x66   :  { %597 = vmatmul.mubr.f32.gmra.mrb[24].mxu0 %v129_v34  ;;  %1225 = vmatprep.mubr.f32.mxu1 %v854_v38  ;;  %v863_v38 = vrot.slane %v2794_v4, 3 }
  0x67   :  { %2198 = vmatpush3.bf16.msra.mxu0 %v2425_v62  ;;  %601 = vmatprep.mubr.f32.mxu0 %v155_v39  ;;  %v807_v62 = vrot.slane %v2691_v21, 1  ;;  %v2996_v39 = vld [vmem:[#allocation17_spill] sm:$0xff] }
  0x68   :  { %2230 = vmatpush3.bf16.msra.mxu1 %v2429_v63  ;;  %2200 = vmatprep.subr.bf16.mxu0 %v2431_v0  ;;  %v2732_v63 = vld [vmem:[%s2944_s0 + $0x50] sm:$0xff] }
  0x69   :  { %2232 = vmatprep.subr.bf16.mxu1 %v2434_v5  ;;  %v808_v0 = vsel %vm46_vm0, %v806_v56, %v807_v62  ;;  %v829_v5 = vrot.slane %v2686_v59, 2  ;;  %v818_v56 = vsel %vm46_vm0, %v815_v17, %v817_v13 }
  0x6a   :  { %602 = vmatmul.mubr.f32.gmra.mrb[26].mxu0 %v131_v50  ;;  %v2997_v50 = vld [vmem:[#allocation18_spill] sm:$0xff] }
  0x6b   :  { %2202 = vmatpush3.bf16.msra.mxu0 %v2437_v14  ;;  %606 = vmatprep.mubr.f32.mxu0 %v157_v51  ;;  %v830_v14 = vrot.slane %v2691_v21, 2  ;;  %v840_v51 = vrot.slane %v2794_v4, 2 }
  0x6c   :  { %2234 = vmatpush3.bf16.msra.mxu1 %v2441_v19  ;;  %2204 = vmatprep.subr.bf16.mxu0 %v2443_v20  ;;  %v809_v19 = vrot.slane %v2732_v63, 1  ;;  %v855_v20 = vrot.slane %v2732_v63, 3 }
  0x6d   :  { %2236 = vmatprep.subr.bf16.mxu1 %v2456_v27  ;;  %v2746_v27 = vld [vmem:[%s2944_s0 + $0x58] sm:$0xff] }
  0x6e   :  { %607 = vmatmul.mubr.f32.gmra.mrb[28].mxu0 %v133_v52  ;;  %v810_v35 = vsel %vm46_vm0, %v807_v62, %v809_v19  ;;  %v856_v24 = vsel %vm94_vm1, %v853_v55, %v855_v20  ;;  %v811_v15 = vrot.slane %v2746_v27, 1  ;;  %v857_v47 = vrot.slane %v2746_v27, 3  ;;  %v2998_v52 = vld [vmem:[#allocation19_spill] sm:$0xff] }
  0x6f   :  { %2206 = vmatpush3.bf16.msra.mxu0 %v2463_v41  ;;  %611 = vmatprep.mubr.f32.mxu0 %v156_v43  ;;  %v2985_v41 = vld [vmem:[#allocation6_spill] sm:$0xff]  ;;  %v834_v29 = vrot.slane %v2746_v27, 2  ;;  %v838_v55 = vrot.slane %v2778_v8, 2  ;;  %v2810_v43 = vld [vmem:[%s2944_s0 + $0x78] sm:$0xff]  ;;  %v864_v62 = vsel %vm94_vm1, %v861_v25, %v863_v38 }
  0x70   :  { %2238 = vmatpush3.bf16.msra.mxu1 %v2468_v44  ;;  %2208 = vmatprep.subr.bf16.mxu0 %v2470_v45  ;;  %v831_v44 = vsel %vm70_vm2, %v829_v5, %v830_v14  ;;  %v2986_v45 = vld [vmem:[#allocation7_spill] sm:$0xff]  ;;  %v812_v9 = vsel %vm46_vm0, %v809_v19, %v811_v15  ;;  %v858_v6 = vsel %vm94_vm1, %v855_v20, %v857_v47  ;;  %v865_v5 = vrot.slane %v2810_v43, 3 }
  0x71   :  { %2240 = vmatprep.subr.bf16.mxu1 %v2474_v53  ;;  %v832_v53 = vrot.slane %v2732_v63, 2  ;;  %v841_v19 = vsel %vm70_vm2, %v838_v55, %v840_v51  ;;  %v842_v20 = vrot.slane %v2810_v43, 2 }
  0x72   :  { %612 = vmatmul.mubr.f32.gmra.mrb[30].mxu0 %v132_v48 }
  0x73   :  { %2210 = vmatpush3.bf16.msra.mxu0 %v2482_v61  ;;  %1120 = vmatprep.mubr.f32.mxu0 %v808_v0  ;;  %v2762_v61 = vld [vmem:[%s2944_s0 + $0x60] sm:$0xff]  ;;  %v833_v31 = vsel %vm70_vm2, %v830_v14, %v832_v53  ;;  %v835_v57 = vsel %vm70_vm2, %v832_v53, %v834_v29  ;;  %v819_v0 = vrot.slane %v2810_v43, 1  ;;  %v2999_v14 = vld [vmem:[#allocation20_spill] sm:$0xff]  ;;  %v843_v53 = vsel %vm70_vm2, %v840_v51, %v842_v20 }
  0x74   :  { %2242 = vmatpush3.bf16.msra.mxu1 %v2985_v41  ;;  %2244 = vmatprep.subr.bf16.mxu0 %v2986_v45  ;;  %v813_v42 = vrot.slane %v2762_v61, 1  ;;  %v859_v3 = vrot.slane %v2762_v61, 3  ;;  %v836_v12 = vrot.slane %v2762_v61, 2  ;;  %v3000_v41 = vld [vmem:[#allocation21_spill] sm:$0xff]  ;;  %v866_v45 = vsel %vm94_vm1, %v863_v38, %v865_v5 }
  0x75   :  { %2276 = vmatprep.subr.bf16.mxu1 %v2987_v54 }
  0x76   :  { %1121 = vmatmul.mubr.f32.vlgmr.msra.gmra.mrb[32].mxu0 %v2686_v59  ;;  %v814_v32 = vsel %vm46_vm0, %v811_v15, %v813_v42  ;;  %v860_v16 = vsel %vm94_vm1, %v857_v47, %v859_v3  ;;  %v837_v33 = vsel %vm70_vm2, %v834_v29, %v836_v12  ;;  %v816_v23 = vsel %vm46_vm0, %v813_v42, %v815_v17 }
  0x77   :  { %1226 = vmatmul.mubr.f32.vlgmr.msra.gmra.mrb[24].mxu1 %v831_v44  ;;  %2246 = vmatpush3.bf16.msra.mxu0 %v2988_v46  ;;  %v862_v34 = vsel %vm94_vm1, %v859_v3, %v861_v25  ;;  %v839_v48 = vsel %vm70_vm2, %v836_v12, %v838_v55  ;;  %v820_v44 = vsel %vm46_vm0, %v817_v13, %v819_v0  ;;  %v924_v46 = vrot.slane %v2732_v63, 6 }
  0x78   :  { %1125 = vmatprep.mubr.f32.mxu0 %v810_v35  ;;  %1230 = vmatprep.mubr.f32.mxu1 %v856_v24  ;;  %v899_v35 = vrot.slane %v2691_v21, 5  ;;  %v921_v24 = vrot.slane %v2686_v59, 6  ;;  %v928_v29 = vrot.slane %v2762_v61, 6  ;;  %v905_v42 = vrot.slane %v2762_v61, 5 }
  0x79   :  { %2248 = vmatprep.subr.bf16.mxu0 %v2989_v60  ;;  %2278 = vmatpush3.bf16.msra.mxu1 %v2987_v54  ;;  %v922_v54 = vrot.slane %v2691_v21, 6  ;;  %v932_v3 = vrot.slane %v2794_v4, 6  ;;  %v884_v25 = vrot.slane %v2778_v8, 4 }
  0x7a   :  { %1126 = vmatmul.mubr.f32.gmra.mrb[34].mxu0 %v2691_v21  ;;  %2280 = vmatprep.subr.bf16.mxu1 %v2990_v7 }
  0x7b   :  { %1231 = vmatmul.mubr.f32.gmra.mrb[26].mxu1 %v833_v31  ;;  %2250 = vmatpush3.bf16.msra.mxu0 %v2991_v28  ;;  %v923_v47 = vsel %vm166_vm4, %v921_v24, %v922_v54  ;;  %v925_v31 = vsel %vm166_vm4, %v922_v54, %v924_v46  ;;  %v934_v28 = vrot.slane %v2810_v43, 6 }
  0x7c   :  { %1130 = vmatprep.mubr.f32.mxu0 %v812_v9  ;;  %1235 = vmatprep.mubr.f32.mxu1 %v858_v6  ;;  %v880_v9 = vrot.slane %v2746_v27, 4 }
  0x7d   :  { %2252 = vmatprep.subr.bf16.mxu0 %v2992_v11  ;;  %2282 = vmatpush3.bf16.msra.mxu1 %v2990_v7  ;;  %v907_v11 = vrot.slane %v2778_v8, 5 }
  0x7e   :  { %1131 = vmatmul.mubr.f32.gmra.mrb[36].mxu0 %v2732_v63  ;;  %2284 = vmatprep.subr.bf16.mxu1 %v2993_v26 }
  0x7f   :  { %1236 = vmatmul.mubr.f32.gmra.mrb[28].mxu1 %v835_v57  ;;  %2254 = vmatpush3.bf16.msra.mxu0 %v2994_v1 }
  0x80   :  { %1135 = vmatprep.mubr.f32.mxu0 %v814_v32  ;;  %1240 = vmatprep.mubr.f32.mxu1 %v860_v16  ;;  %v935_v16 = vsel %vm166_vm4, %v932_v3, %v934_v28 }
  0x81   :  { %2256 = vmatprep.subr.bf16.mxu0 %v2995_v30  ;;  %2286 = vmatpush3.bf16.msra.mxu1 %v2993_v26  ;;  %v908_v26 = vsel %vm142_vm3, %v905_v42, %v907_v11  ;;  %v911_v30 = vrot.slane %v2810_v43, 5 }
  0x82   :  { %1136 = vmatmul.mubr.f32.gmra.mrb[38].mxu0 %v2746_v27  ;;  %2288 = vmatprep.subr.bf16.mxu1 %v2996_v39 }
  0x83   :  { %1241 = vmatmul.mubr.f32.gmra.mrb[30].mxu1 %v837_v33  ;;  %2258 = vmatpush3.bf16.msra.mxu0 %v2997_v50  ;;  %v886_v33 = vrot.slane %v2794_v4, 4 }
  0x84   :  { %1140 = vmatprep.mubr.f32.mxu0 %v816_v23  ;;  %1245 = vmatprep.mubr.f32.mxu1 %v862_v34  ;;  %v888_v23 = vrot.slane %v2810_v43, 4 }
  0x85   :  { %2260 = vmatprep.subr.bf16.mxu0 %v2998_v52  ;;  %2290 = vmatpush3.bf16.msra.mxu1 %v2996_v39 }
  0x86   :  { %1141 = vmatmul.mubr.f32.gmra.mrb[40].mxu0 %v2762_v61  ;;  %2292 = vmatprep.subr.bf16.mxu1 %v2582_v10  ;;  %v889_v13 = vsel %vm118_vm5, %v886_v33, %v888_v23 }
  0x87   :  { %1246 = vmatmul.mubr.f32.gmra.mrb[32].mxu1 %v839_v48  ;;  %2262 = vmatpush3.bf16.msra.mxu0 %v2999_v14 }
  0x88   :  { %1145 = vmatprep.mubr.f32.mxu0 %v818_v56  ;;  %1250 = vmatprep.mubr.f32.mxu1 %v864_v62 }
  0x89   :  { %2264 = vmatprep.subr.bf16.mxu0 %v3000_v41  ;;  %2294 = vmatpush3.bf16.msra.mxu1 %v2582_v10  ;;  %v898_v10 = vrot.slane %v2686_v59, 5 }
  0x8a   :  { %1146 = vmatmul.mubr.f32.gmra.mrb[42].mxu0 %v2778_v8  ;;  %2296 = vmatprep.subr.bf16.mxu1 %v2604_v2 }
  0x8b   :  { %1251 = vmatmul.mubr.f32.gmra.mrb[34].mxu1 %v841_v19  ;;  %2266 = vmatpush3.bf16.msra.mxu0 %v2608_v18  ;;  %v875_v18 = vrot.slane %v2686_v59, 4  ;;  %v900_v15 = vsel %vm142_vm3, %v898_v10, %v899_v35 }
  0x8c   :  { %1150 = vmatprep.mubr.f32.mxu0 %v820_v44  ;;  %1255 = vmatprep.mubr.f32.mxu1 %v866_v45 }
  0x8d   :  { %2268 = vmatprep.subr.bf16.mxu0 %v2615_v36  ;;  %2298 = vmatpush3.bf16.msra.mxu1 %v2604_v2  ;;  %v876_v36 = vrot.slane %v2691_v21, 4  ;;  %v901_v2 = vrot.slane %v2732_v63, 5  ;;  %v903_v21 = vrot.slane %v2746_v27, 5 }
  0x8e   :  { %1151 = vmatmul.mubr.f32.gmra.mrb[44].mxu0 %v2794_v4  ;;  %2300 = vmatprep.subr.bf16.mxu1 %v2620_v49 }
  0x8f   :  { %1256 = vmatmul.mubr.f32.gmra.mrb[36].mxu1 %v843_v53  ;;  %2270 = vmatpush3.bf16.msra.mxu0 %v2623_v58  ;;  %v926_v58 = vrot.slane %v2746_v27, 6  ;;  %v877_v59 = vsel %vm118_vm5, %v875_v18, %v876_v36  ;;  %v904_v6 = vsel %vm142_vm3, %v901_v2, %v903_v21  ;;  %v882_v27 = vrot.slane %v2762_v61, 4 }
  0x90   :  { %1155 = vmatprep.mubr.f32.mxu0 %v819_v0  ;;  %1260 = vmatprep.mubr.f32.mxu1 %v865_v5  ;;  %v906_v12 = vsel %vm142_vm3, %v903_v21, %v905_v42  ;;  %v909_v61 = vrot.slane %v2794_v4, 5 }
  0x91   :  { %2272 = vmatprep.subr.bf16.mxu0 %v2628_v40  ;;  %2302 = vmatpush3.bf16.msra.mxu1 %v2620_v49  ;;  %v878_v40 = vrot.slane %v2732_v63, 4  ;;  %v902_v49 = vsel %vm142_vm3, %v899_v35, %v901_v2  ;;  %v927_v60 = vsel %vm166_vm4, %v924_v46, %v926_v58  ;;  %v883_v17 = vsel %vm118_vm5, %v880_v9, %v882_v27 }
  0x92   :  { %1156 = vmatmul.mubr.f32.gmra.mrb[46].mxu0 %v2810_v43  ;;  %2304 = vmatprep.subr.bf16.mxu1 %v2634_v22  ;;  %v885_v1 = vsel %vm118_vm5, %v882_v27, %v884_v25  ;;  %v910_v55 = vsel %vm142_vm3, %v907_v11, %v909_v61  ;;  %v912_v34 = vsel %vm142_vm3, %v909_v61, %v911_v30 }
  0x93   :  { %1261 = vmatmul.mubr.f32.gmra.mrb[38].mxu1 %v842_v20  ;;  %2274 = vmatpush3.bf16.msra.mxu0 %v2639_v37  ;;  %v930_v37 = vrot.slane %v2778_v8, 6  ;;  %v879_v63 = vsel %vm118_vm5, %v876_v36, %v878_v40  ;;  %v881_v57 = vsel %vm118_vm5, %v878_v40, %v880_v9  ;;  %v887_v8 = vsel %vm118_vm5, %v884_v25, %v886_v33 }
  0x94   :  { %1330 = vmatprep.mubr.f32.mxu0 %v900_v15  ;;  %2039 = vmatprep.mubr.f32.mxu1 %v923_v47 }
  0x95   :  { %2306 = vmatpush3.bf16.msra.mxu1 %v2634_v22  ;;  %v929_v22 = vsel %vm166_vm4, %v926_v58, %v928_v29  ;;  %v931_v7 = vsel %vm166_vm4, %v928_v29, %v930_v37  ;;  %v933_v32 = vsel %vm166_vm4, %v930_v37, %v932_v3 }
  0x96   :  { %1331 = vmatmul.mubr.f32.vlgmr.msra.gmra.mrb[48].mxu0 %v877_v59 }
  0x97   :  { %1335 = vmatprep.mubr.f32.mxu0 %v902_v49 }
  0x98   :  { %2040 = vmatmul.mubr.f32.vlgmr.msra.gmra.mrb[40].mxu1 %v925_v31 }
  0x99   :  { %2042 = vmatprep.mubr.f32.mxu1 %v927_v60 }
  0x9a   :  { %1336 = vmatmul.mubr.f32.gmra.mrb[50].mxu0 %v879_v63 }
  0x9b   :  { %1340 = vmatprep.mubr.f32.mxu0 %v904_v6 }
  0x9c   :  { %2043 = vmatmul.mubr.f32.gmra.mrb[42].mxu1 %v929_v22 }
  0x9d   :  { %2045 = vmatprep.mubr.f32.mxu1 %v931_v7 }
  0x9e   :  { %1341 = vmatmul.mubr.f32.gmra.mrb[52].mxu0 %v881_v57 }
  0x9f   :  { %1345 = vmatprep.mubr.f32.mxu0 %v906_v12 }
  0xa0   :  { %2046 = vmatmul.mubr.f32.gmra.mrb[44].mxu1 %v933_v32 }
  0xa1   :  { %2048 = vmatprep.mubr.f32.mxu1 %v935_v16 }
  0xa2   :  { %1346 = vmatmul.mubr.f32.gmra.mrb[54].mxu0 %v883_v17 }
  0xa3   :  { %1350 = vmatprep.mubr.f32.mxu0 %v908_v26 }
  0xa4   :  { %2049 = vmatmul.mubr.f32.gmra.mrb[46].mxu1 %v934_v28 }
  0xa6   :  { %1351 = vmatmul.mubr.f32.gmra.mrb[56].mxu0 %v885_v1 }
  0xa7   :  { %1355 = vmatprep.mubr.f32.mxu0 %v910_v55 }
  0xaa   :  { %1356 = vmatmul.mubr.f32.gmra.mrb[58].mxu0 %v887_v8 }
  0xab   :  { %1360 = vmatprep.mubr.f32.mxu0 %v912_v34 }
  0xae   :  { %1361 = vmatmul.mubr.f32.gmra.mrb[60].mxu0 %v889_v13 }
  0xaf   :  { %1365 = vmatprep.mubr.f32.mxu0 %v911_v30 }
  0xb2   :  { %1366 = vmatmul.mubr.f32.gmra.mrb[62].mxu0 %v888_v23 }
 0x109   :  { %v1611_v4 = vpop.f32.mrb[0].mxu0 }
 0x10a   :  { %v1667_v38 = vpop.f32.mrb[0].mxu1  ;;  %v1612_v39 = vpop.f32.mrb[1].mxu0 }
 0x10b   :  { %v1613_v50 = vadd.f32 %v1612_v39, %v1611_v4  ;;  %v1668_v48 = vpop.f32.mrb[1].mxu1 }
 0x10c   :  { %v1669_v51 = vadd.f32 %v1668_v48, %v1667_v38 }
 0x10d   :  { %v1614_v52 = vpop.f32.mrb[2].mxu0 }
 0x10e   :  { %v474_v56 = vadd.f32 %v1669_v51, %v1613_v50  ;;  %v1670_v62 = vpop.f32.mrb[2].mxu1  ;;  %v1615_v0 = vpop.f32.mrb[3].mxu0 }
 0x10f   :  { %v1616_v43 = vadd.f32 %v1615_v0, %v1614_v52  ;;  %v1671_v5 = vpop.f32.mrb[3].mxu1 }
 0x110   :  { %v1672_v14 = vadd.f32 %v1671_v5, %v1670_v62 }
 0x111   :  { %v1617_v19 = vpop.f32.mrb[4].mxu0 }
 0x112   :  { %v479_v20 = vadd.f32 %v1672_v14, %v1616_v43  ;;  %v1673_v41 = vpop.f32.mrb[4].mxu1  ;;  %v1618_v44 = vpop.f32.mrb[5].mxu0 }
 0x113   :  { %v1619_v45 = vadd.f32 %v1618_v44, %v1617_v19  ;;  %v1674_v53 = vpop.f32.mrb[5].mxu1 }
 0x114   :  { %v1675_v10 = vadd.f32 %v1674_v53, %v1673_v41 }
 0x115   :  { %v1620_v35 = vpop.f32.mrb[6].mxu0 }
 0x116   :  { %v484_v24 = vadd.f32 %v1675_v10, %v1619_v45  ;;  %v1676_v54 = vpop.f32.mrb[6].mxu1  ;;  %v1621_v18 = vpop.f32.mrb[7].mxu0 }
 0x117   :  { %v1622_v36 = vadd.f32 %v1621_v18, %v1620_v35  ;;  %v1677_v2 = vpop.f32.mrb[7].mxu1 }
 0x118   :  { %v1678_v15 = vadd.f32 %v1677_v2, %v1676_v54 }
 0x119   :  { %v1623_v47 = vpop.f32.mrb[8].mxu0 }
 0x11a   :  { %v489_v46 = vadd.f32 %v1678_v15, %v1622_v36  ;;  %v1679_v58 = vpop.f32.mrb[8].mxu1  ;;  %v1624_v59 = vpop.f32.mrb[9].mxu0 }
 0x11b   :  { %v1625_v40 = vadd.f32 %v1624_v59, %v1623_v47  ;;  %v1680_v49 = vpop.f32.mrb[9].mxu1 }
 0x11c   :  { %v1681_v21 = vadd.f32 %v1680_v49, %v1679_v58 }
 0x11d   :  { %v1626_v31 = vpop.f32.mrb[10].mxu0 }
 0x11e   :  { %v494_v29 = vadd.f32 %v1681_v21, %v1625_v40  ;;  %v1682_v60 = vpop.f32.mrb[10].mxu1  ;;  %v1627_v37 = vpop.f32.mrb[11].mxu0 }
 0x11f   :  { %v1628_v63 = vadd.f32 %v1627_v37, %v1626_v31  ;;  %v1683_v9 = vpop.f32.mrb[11].mxu1 }
 0x120   :  { %v1684_v6 = vadd.f32 %v1683_v9, %v1682_v60 }
 0x121   :  { %v1629_v42 = vpop.f32.mrb[12].mxu0 }
 0x122   :  { %v499_v22 = vadd.f32 %v1684_v6, %v1628_v63  ;;  %v1685_v3 = vpop.f32.mrb[12].mxu1  ;;  %v1630_v7 = vpop.f32.mrb[13].mxu0 }
 0x123   :  { %v1631_v28 = vadd.f32 %v1630_v7, %v1629_v42  ;;  %v1686_v57 = vpop.f32.mrb[13].mxu1 }
 0x124   :  { %v1687_v27 = vadd.f32 %v1686_v57, %v1685_v3 }
 0x125   :  { %v1632_v12 = vpop.f32.mrb[14].mxu0 }
 0x126   :  { %v504_v11 = vadd.f32 %v1687_v27, %v1631_v28  ;;  %v1688_v32 = vpop.f32.mrb[14].mxu1  ;;  %v1633_v16 = vpop.f32.mrb[15].mxu0 }
 0x127   :  { %v1634_v17 = vadd.f32 %v1633_v16, %v1632_v12  ;;  %v1689_v25 = vpop.f32.mrb[15].mxu1 }
 0x128   :  { %v1690_v26 = vadd.f32 %v1689_v25, %v1688_v32 }
 0x129   :  { %v1723_v61 = vpop.f32.mrb[16].mxu0 }
 0x12a   :  { %v509_v1 = vadd.f32 %v1690_v26, %v1634_v17  ;;  %v1724_v33 = vpop.f32.mrb[17].mxu0  ;;  %v1997_v55 = vpop.f32.mrb[16].mxu1 }
 0x12b   :  { %v1725_v30 = vadd.f32 %v1724_v33, %v1723_v61  ;;  %v683_v8 = vpop.f32.mrb[17].mxu1 }
 0x12d   :  { %v1726_v23 = vpop.f32.mrb[18].mxu0  ;;  %v579_v34 = vadd.f32 %v1725_v30, %v474_v56 }
 0x12e   :  { %v1727_v13 = vpop.f32.mrb[19].mxu0 }
 0x12f   :  { %v1728_v4 = vadd.f32 %v1727_v13, %v1726_v23  ;;  %v684_v38 = vadd.f32 %v683_v8, %v579_v34 }
 0x130   :  { %v2000_v39 = vpop.f32.mrb[18].mxu1 }
 0x131   :  { %v584_v50 = vadd.f32 %v1728_v4, %v479_v20  ;;  %722 = vst [vmem:[#allocation2] sm:$0xff] %v684_v38  ;;  %v1729_v48 = vpop.f32.mrb[20].mxu0  ;;  %v693_v51 = vpop.f32.mrb[19].mxu1 }
 0x132   :  { %v1730_v52 = vpop.f32.mrb[21].mxu0 }
 0x133   :  { %v689_v62 = vadd.f32 %v1997_v55, %v584_v50  ;;  %v1731_v0 = vadd.f32 %v1730_v52, %v1729_v48 }
 0x134   :  { %v2003_v43 = vpop.f32.mrb[20].mxu1 }
 0x135   :  { %723 = vst [vmem:[#allocation2 + $0x8] sm:$0xff] %v689_v62  ;;  %v1732_v5 = vpop.f32.mrb[22].mxu0  ;;  %v589_v14 = vadd.f32 %v1731_v0, %v484_v24  ;;  %v703_v19 = vpop.f32.mrb[21].mxu1 }
 0x136   :  { %v1733_v41 = vpop.f32.mrb[23].mxu0 }
 0x137   :  { %v1734_v44 = vadd.f32 %v1733_v41, %v1732_v5  ;;  %v694_v45 = vadd.f32 %v693_v51, %v589_v14 }
 0x138   :  { %v2006_v56 = vpop.f32.mrb[22].mxu1 }
 0x139   :  { %v594_v53 = vadd.f32 %v1734_v44, %v489_v46  ;;  %724 = vst [vmem:[#allocation2 + $0x10] sm:$0xff] %v694_v45  ;;  %v1735_v10 = vpop.f32.mrb[24].mxu0  ;;  %v713_v35 = vpop.f32.mrb[23].mxu1  ;;  %v2893_v46 = vld [vmem:[%s2946_s2] ss:$0 sm:$0xff] }
 0x13a   :  { %v1736_v20 = vpop.f32.mrb[25].mxu0 }
 0x13b   :  { %v699_v54 = vadd.f32 %v2000_v39, %v594_v53  ;;  %v1737_v18 = vadd.f32 %v1736_v20, %v1735_v10 }
 0x13d   :  { %725 = vst [vmem:[#allocation2 + $0x18] sm:$0xff] %v699_v54  ;;  %v1738_v36 = vpop.f32.mrb[26].mxu0  ;;  %v599_v2 = vadd.f32 %v1737_v18, %v494_v29 }
 0x13e   :  { %v1739_v15 = vpop.f32.mrb[27].mxu0 }
 0x13f   :  { %v1740_v47 = vadd.f32 %v1739_v15, %v1738_v36  ;;  %v704_v58 = vadd.f32 %v703_v19, %v599_v2 }
 0x140   :  { %v730_v59 = vld [vmem:[#allocation2] ss:$3 sm:$0xff]  ;;  %v736_v24 = vld [vmem:[#allocation2 + $0x1] ss:$3 sm:$0xff]  ;;  %v745_v31 = vld [vmem:[#allocation2 + $0x2] ss:$3 sm:$0xff] }
 0x141   :  { %v741_v40 = vmax.f32 %v730_v59, %v736_v24  ;;  %v604_v49 = vadd.f32 %v1740_v47, %v499_v22  ;;  %726 = vst [vmem:[#allocation2 + $0x20] sm:$0xff] %v704_v58  ;;  %v1741_v21 = vpop.f32.mrb[28].mxu0 }
 0x142   :  { %v1742_v60 = vpop.f32.mrb[29].mxu0 }
 0x143   :  { %v750_v37 = vmax.f32 %v741_v40, %v745_v31  ;;  %v709_v63 = vadd.f32 %v2003_v43, %v604_v49  ;;  %v1743_v9 = vadd.f32 %v1742_v60, %v1741_v21 }
 0x145   :  { %v760_v29 = vadd.f32 %v2893_v46, %v750_v37  ;;  %727 = vst [vmem:[#allocation2 + $0x28] sm:$0xff] %v709_v63  ;;  %v1744_v6 = vpop.f32.mrb[30].mxu0  ;;  %v609_v42 = vadd.f32 %v1743_v9, %v504_v11 }
 0x146   :  { %v1745_v3 = vpop.f32.mrb[31].mxu0 }
 0x147   :  { %763 = vst [vmem:[%s2947_s3] sm:$0xff] %v760_v29  ;;  %v1746_v22 = vadd.f32 %v1745_v3, %v1744_v6  ;;  %v714_v7 = vadd.f32 %v713_v35, %v609_v42  ;;  %v776_v51 = vmul.f32 %v760_v29, %v760_v29 }
 0x149   :  { %v614_v28 = vadd.f32 %v1746_v22, %v509_v1  ;;  %728 = vst [vmem:[#allocation2 + $0x30] sm:$0xff] %v714_v7  ;;  %v1803_v57 = vpop.f32.mrb[32].mxu0 }
 0x14a   :  { %v1859_v27 = vpop.f32.mrb[24].mxu1  ;;  %v1804_v12 = vpop.f32.mrb[33].mxu0 }
 0x14b   :  { %v719_v32 = vadd.f32 %v2006_v56, %v614_v28  ;;  %v1805_v16 = vadd.f32 %v1804_v12, %v1803_v57  ;;  %v1860_v17 = vpop.f32.mrb[25].mxu1 }
 0x14c   :  { %v732_v25 = vld [vmem:[#allocation2 + $0x18] ss:$3 sm:$0xff]  ;;  %v738_v26 = vld [vmem:[#allocation2 + $0x19] ss:$3 sm:$0xff]  ;;  %v1861_v61 = vadd.f32 %v1860_v17, %v1859_v27  ;;  %v747_v55 = vld [vmem:[#allocation2 + $0x1a] ss:$3 sm:$0xff] }
 0x14d   :  { %v742_v33 = vmax.f32 %v732_v25, %v738_v26  ;;  %729 = vst [vmem:[#allocation2 + $0x38] sm:$0x1] %v719_v32  ;;  %v1806_v11 = vpop.f32.mrb[34].mxu0 }
 0x14e   :  { %v2899_v30 = vadd.f32 %v1861_v61, %v1805_v16  ;;  %v1862_v8 = vpop.f32.mrb[26].mxu1  ;;  %v1807_v23 = vpop.f32.mrb[35].mxu0 }
 0x14f   :  { %v751_v34 = vmax.f32 %v742_v33, %v747_v55  ;;  %v1808_v1 = vadd.f32 %v1807_v23, %v1806_v11  ;;  %v1863_v13 = vpop.f32.mrb[27].mxu1 }
 0x150   :  { %v734_v4 = vld [vmem:[#allocation2 + $0x30] ss:$3 sm:$0x7]  ;;  %v740_v38 = vld [vmem:[#allocation2 + $0x31] ss:$3 sm:$0x7]  ;;  %v1864_v39 = vadd.f32 %v1863_v13, %v1862_v8 }
 0x151   :  { %v761_v50 = vadd.f32 %v2893_v46, %v751_v34  ;;  %v1809_v48 = vpop.f32.mrb[36].mxu0  ;;  %v743_v14 = vmax.f32 %v734_v4, %v740_v38 }
 0x152   :  { %v2902_v52 = vadd.f32 %v1864_v39, %v1808_v1  ;;  %v1865_v62 = vpop.f32.mrb[28].mxu1  ;;  %v1810_v0 = vpop.f32.mrb[37].mxu0 }
 0x153   :  { %764 = vst [vmem:[%s2947_s3 + $0x8] sm:$0xff] %v761_v50  ;;  %v766_v43 = vadd.f32 %v761_v50, %v760_v29  ;;  %v777_v5 = vmul.f32 %v761_v50, %v761_v50  ;;  %v1811_v19 = vadd.f32 %v1810_v0, %v1809_v48  ;;  %v1866_v41 = vpop.f32.mrb[29].mxu1 }
 0x154   :  { %v749_v44 = vld [vmem:[#allocation2 + $0x32] ss:$3 sm:$0x7]  ;;  %v1867_v45 = vadd.f32 %v1866_v41, %v1865_v62 }
 0x155   :  { %v779_v56 = vadd.f32 %v777_v5, %v776_v51  ;;  %v752_v53 = vmax.f32 %v743_v14, %v749_v44  ;;  %v1812_v10 = vpop.f32.mrb[38].mxu0 }
 0x156   :  { %v2907_v35 = vadd.f32 %v1867_v45, %v1811_v19  ;;  %v1868_v20 = vpop.f32.mrb[30].mxu1  ;;  %v1813_v54 = vpop.f32.mrb[39].mxu0 }
 0x157   :  { %v762_v18 = vadd.f32 %v2893_v46, %v752_v53  ;;  %v1814_v36 = vadd.f32 %v1813_v54, %v1812_v10  ;;  %v1869_v2 = vpop.f32.mrb[31].mxu1 }
 0x158   :  { %v1870_v15 = vadd.f32 %v1869_v2, %v1868_v20 }
 0x159   :  { %765 = vst [vmem:[%s2947_s3 + $0x10] sm:$0x7] %v762_v18  ;;  %v767_v47 = vsel %vm142_vm3, %v762_v18, 0.0  ;;  %v778_v58 = vmul.f32 %v762_v18, %v762_v18  ;;  %v1815_v59 = vpop.f32.mrb[40].mxu0 }
 0x15a   :  { %v2914_v24 = vadd.f32 %v767_v47, %v766_v43  ;;  %v1243_v40 = vadd.f32 %v1870_v15, %v1814_v36  ;;  %v1871_v49 = vpop.f32.mrb[32].mxu1  ;;  %v1816_v21 = vpop.f32.mrb[41].mxu0 }
 0x15b   :  { %v780_v31 = vsel %vm142_vm3, %v778_v58, 0.0  ;;  %v1817_v60 = vadd.f32 %v1816_v21, %v1815_v59  ;;  %v1872_v37 = vpop.f32.mrb[33].mxu1 }
 0x15c   :  { %v2917_v63 = vadd.f32 %v780_v31, %v779_v56  ;;  %v1873_v9 = vadd.f32 %v1872_v37, %v1871_v49 }
 0x15d   :  { %v1818_v29 = vpop.f32.mrb[42].mxu0 }
 0x15e   :  { %v1248_v6 = vadd.f32 %v1873_v9, %v1817_v60  ;;  %v1874_v42 = vpop.f32.mrb[34].mxu1  ;;  %v1819_v3 = vpop.f32.mrb[43].mxu0 }
 0x15f   :  { %v1820_v22 = vadd.f32 %v1819_v3, %v1818_v29  ;;  %v1875_v7 = vpop.f32.mrb[35].mxu1 }
 0x160   :  { %v1876_v28 = vadd.f32 %v1875_v7, %v1874_v42 }
 0x161   :  { %v1821_v57 = vpop.f32.mrb[44].mxu0 }
 0x162   :  { %v1253_v27 = vadd.f32 %v1876_v28, %v1820_v22  ;;  %v1877_v12 = vpop.f32.mrb[36].mxu1  ;;  %v1822_v32 = vpop.f32.mrb[45].mxu0 }
 0x163   :  { %v1823_v16 = vadd.f32 %v1822_v32, %v1821_v57  ;;  %v1878_v17 = vpop.f32.mrb[37].mxu1 }
 0x164   :  { %v1879_v25 = vadd.f32 %v1878_v17, %v1877_v12 }
 0x165   :  { %v1824_v26 = vpop.f32.mrb[46].mxu0 }
 0x166   :  { %v1258_v61 = vadd.f32 %v1879_v25, %v1823_v16  ;;  %v1880_v33 = vpop.f32.mrb[38].mxu1  ;;  %v1825_v11 = vpop.f32.mrb[47].mxu0 }
 0x167   :  { %v1826_v55 = vadd.f32 %v1825_v11, %v1824_v26  ;;  %v1881_v8 = vpop.f32.mrb[39].mxu1 }
 0x168   :  { %v1882_v23 = vadd.f32 %v1881_v8, %v1880_v33 }
 0x169   :  { %v1915_v34 = vpop.f32.mrb[48].mxu0 }
 0x16a   :  { %v1263_v1 = vadd.f32 %v1882_v23, %v1826_v55  ;;  %v1916_v13 = vpop.f32.mrb[49].mxu0 }
 0x16b   :  { %v1917_v4 = vadd.f32 %v1916_v13, %v1915_v34  ;;  %v2041_v38 = vpop.f32.mrb[40].mxu1 }
 0x16c   :  { %v1437_v39 = vpop.f32.mrb[41].mxu1 }
 0x16d   :  { %v1918_v50 = vpop.f32.mrb[50].mxu0  ;;  %v1333_v48 = vadd.f32 %v1917_v4, %v2899_v30 }
 0x16e   :  { %v1919_v51 = vpop.f32.mrb[51].mxu0 }
 0x16f   :  { %v1920_v62 = vadd.f32 %v1919_v51, %v1918_v50  ;;  %v1438_v0 = vadd.f32 %v1437_v39, %v1333_v48  ;;  %v2044_v43 = vpop.f32.mrb[42].mxu1 }
 0x170   :  { %v1447_v5 = vpop.f32.mrb[43].mxu1 }
 0x171   :  { %v1338_v14 = vadd.f32 %v1920_v62, %v2902_v52  ;;  %1477 = vst [vmem:[#allocation2 + $0x40] sm:$0xff] %v1438_v0  ;;  %v1921_v19 = vpop.f32.mrb[52].mxu0 }
 0x172   :  { %v1922_v41 = vpop.f32.mrb[53].mxu0 }
 0x173   :  { %v1443_v44 = vadd.f32 %v2041_v38, %v1338_v14  ;;  %v1923_v45 = vadd.f32 %v1922_v41, %v1921_v19  ;;  %v2047_v56 = vpop.f32.mrb[44].mxu1  ;;  %v769_v38 = vrot.slane %v2914_v24, 4 }
 0x174   :  { %v1457_v53 = vpop.f32.mrb[45].mxu1 }
 0x175   :  { %1478 = vst [vmem:[#allocation2 + $0x48] sm:$0xff] %v1443_v44  ;;  %v1924_v10 = vpop.f32.mrb[54].mxu0  ;;  %v1343_v20 = vadd.f32 %v1923_v45, %v2907_v35  ;;  %v770_v62 = vadd.f32 %v769_v38, %v2914_v24 }
 0x176   :  { %v1925_v54 = vpop.f32.mrb[55].mxu0 }
 0x177   :  { %v1926_v30 = vadd.f32 %v1925_v54, %v1924_v10  ;;  %v1448_v18 = vadd.f32 %v1447_v5, %v1343_v20  ;;  %v2050_v36 = vpop.f32.mrb[46].mxu1 }
 0x178   :  { %v1467_v2 = vpop.f32.mrb[47].mxu1 }
 0x179   :  { %v1348_v15 = vadd.f32 %v1926_v30, %v1243_v40  ;;  %1479 = vst [vmem:[#allocation2 + $0x50] sm:$0xff] %v1448_v18  ;;  %v1927_v47 = vpop.f32.mrb[56].mxu0 }
 0x17a   :  { %v1928_v52 = vpop.f32.mrb[57].mxu0 }
 0x17b   :  { %v1453_v58 = vadd.f32 %v2044_v43, %v1348_v15  ;;  %v1929_v59 = vadd.f32 %v1928_v52, %v1927_v47 }
 0x17d   :  { %1480 = vst [vmem:[#allocation2 + $0x58] sm:$0xff] %v1453_v58  ;;  %v1930_v49 = vpop.f32.mrb[58].mxu0  ;;  %v1353_v21 = vadd.f32 %v1929_v59, %v1248_v6 }
 0x17e   :  { %v1931_v31 = vpop.f32.mrb[59].mxu0 }
 0x17f   :  { %v1932_v60 = vadd.f32 %v1931_v31, %v1930_v49  ;;  %v1458_v37 = vadd.f32 %v1457_v53, %v1353_v21 }
 0x180   :  { %v1485_v9 = vld [vmem:[#allocation2 + $0x40] ss:$3 sm:$0xff]  ;;  %v1491_v29 = vld [vmem:[#allocation2 + $0x41] ss:$3 sm:$0xff]  ;;  %v1500_v22 = vld [vmem:[#allocation2 + $0x42] ss:$3 sm:$0xff] }
 0x181   :  { %v1496_v35 = vmax.f32 %v1485_v9, %v1491_v29  ;;  %v1358_v42 = vadd.f32 %v1932_v60, %v1253_v27  ;;  %1481 = vst [vmem:[#allocation2 + $0x60] sm:$0xff] %v1458_v37  ;;  %v1933_v3 = vpop.f32.mrb[60].mxu0 }
 0x182   :  { %v1934_v7 = vpop.f32.mrb[61].mxu0 }
 0x183   :  { %v1505_v40 = vmax.f32 %v1496_v35, %v1500_v22  ;;  %v1463_v28 = vadd.f32 %v2047_v56, %v1358_v42  ;;  %v1935_v57 = vadd.f32 %v1934_v7, %v1933_v3  ;;  %v771_v56 = vrot.slane %v770_v62, 2 }
 0x185   :  { %v1515_v12 = vadd.f32 %v2893_v46, %v1505_v40  ;;  %1482 = vst [vmem:[#allocation2 + $0x68] sm:$0xff] %v1463_v28  ;;  %v1936_v32 = vpop.f32.mrb[62].mxu0  ;;  %v1363_v16 = vadd.f32 %v1935_v57, %v1258_v61 }
 0x186   :  { %v1937_v6 = vpop.f32.mrb[63].mxu0 }
 0x187   :  { %1576 = vst [vmem:[%s2947_s3 + $0x18] sm:$0xff] %v1515_v12  ;;  %v1938_v17 = vadd.f32 %v1937_v6, %v1936_v32  ;;  %v1468_v25 = vadd.f32 %v1467_v2, %v1363_v16  ;;  %v1532_v43 = vmul.f32 %v1515_v12, %v1515_v12 }
 0x189   :  { %v1368_v27 = vadd.f32 %v1938_v17, %v1263_v1  ;;  %1483 = vst [vmem:[#allocation2 + $0x70] sm:$0xff] %v1468_v25  ;;  %v782_v1 = vrot.slane %v2917_v63, 4 }
 0x18b   :  { %v1473_v26 = vadd.f32 %v2050_v36, %v1368_v27  ;;  %v783_v0 = vadd.f32 %v782_v1, %v2917_v63  ;;  %v772_v63 = vadd.f32 %v771_v56, %v770_v62 }
 0x18c   :  { %v1487_v33 = vld [vmem:[#allocation2 + $0x58] ss:$3 sm:$0xff]  ;;  %v1493_v11 = vld [vmem:[#allocation2 + $0x59] ss:$3 sm:$0xff]  ;;  %v1502_v8 = vld [vmem:[#allocation2 + $0x5a] ss:$3 sm:$0xff] }
 0x18d   :  { %v1497_v55 = vmax.f32 %v1487_v33, %v1493_v11  ;;  %1484 = vst [vmem:[#allocation2 + $0x78] sm:$0x1] %v1473_v26  ;;  %v784_v53 = vrot.slane %v783_v0, 2  ;;  %v773_v15 = vrot.slane %v772_v63, 1 }
 0x18f   :  { %v1506_v23 = vmax.f32 %v1497_v55, %v1502_v8  ;;  %v785_v54 = vadd.f32 %v784_v53, %v783_v0  ;;  %v774_v21 = vadd.f32 %v773_v15, %v772_v63 }
 0x190   :  { %v1489_v34 = vld [vmem:[#allocation2 + $0x70] ss:$3 sm:$0x7]  ;;  %v1495_v13 = vld [vmem:[#allocation2 + $0x71] ss:$3 sm:$0x7] }
 0x191   :  { %v1516_v61 = vadd.f32 %v2893_v46, %v1506_v23  ;;  %v1498_v4 = vmax.f32 %v1489_v34, %v1495_v13  ;;  %v786_v47 = vrot.slane %v785_v54, 1 }
 0x193   :  { %1577 = vst [vmem:[%s2947_s3 + $0x20] sm:$0xff] %v1516_v61  ;;  %v1533_v48 = vmul.f32 %v1516_v61, %v1516_v61  ;;  %v1522_v5 = vadd.f32 %v1516_v61, %v1515_v12  ;;  %v787_v31 = vadd.f32 %v786_v47, %v785_v54 }
 0x194   :  { %v1504_v39 = vld [vmem:[#allocation2 + $0x72] ss:$3 sm:$0x7] }
 0x195   :  { %v1507_v50 = vmax.f32 %v1498_v4, %v1504_v39  ;;  %v1535_v41 = vadd.f32 %v1533_v48, %v1532_v43 }
 0x197   :  { %v1517_v51 = vadd.f32 %v2893_v46, %v1507_v50 }
 0x199   :  { %1578 = vst [vmem:[%s2947_s3 + $0x28] sm:$0x7] %v1517_v51  ;;  %v1523_v14 = vsel %vm142_vm3, %v1517_v51, 0.0  ;;  %v1534_v19 = vmul.f32 %v1517_v51, %v1517_v51 }
 0x19a   :  { %v1524_v44 = vadd.f32 %v1523_v14, %v1522_v5 }
 0x19b   :  { %v1536_v45 = vsel %vm142_vm3, %v1534_v19, 0.0 }
 0x19c   :  { %v1525_v46 = vrot.slane %v1524_v44, 4  ;;  %v1537_v10 = vadd.f32 %v1536_v45, %v1535_v41 }
 0x19e   :  { %v1526_v24 = vadd.f32 %v1525_v46, %v1524_v44  ;;  %v1538_v20 = vrot.slane %v1537_v10, 4 }
 0x1a0   :  { %v1527_v30 = vrot.slane %v1526_v24, 2  ;;  %v1539_v18 = vadd.f32 %v1538_v20, %v1537_v10 }
 0x1a2   :  { %v1528_v36 = vadd.f32 %v1527_v30, %v1526_v24  ;;  %v1540_v2 = vrot.slane %v1539_v18, 2 }
 0x1a4   :  { %v1529_v52 = vrot.slane %v1528_v36, 1  ;;  %v1541_v58 = vadd.f32 %v1540_v2, %v1539_v18 }
 0x1a6   :  { %v1530_v59 = vadd.f32 %v1529_v52, %v1528_v36  ;;  %v1542_v49 = vrot.slane %v1541_v58, 1 }
 0x1a8   :  { %v1543_v60 = vadd.f32 %v1542_v49, %v1541_v58  ;;  %v1531_v37 = vadd.f32 %v1530_v59, %v774_v21 }
 0x1aa   :  { %v1544_v9 = vadd.f32 %v1543_v60, %v787_v31 }
 0x1ac   :  { %v1546_v29 = vsel %vm1545_vm6, %v1531_v37, %v1544_v9 }
 0x1ad   :  { %v1547_v35 = vsel %vm166_vm4, %v1546_v29, 0.0 }
 0x1ae   :  { %1548 = vst [vmem:[%s2948_s4] sm:$0xff] %v1547_v35 }
 0x1af   :  { %1557 = vsyncpa [#allocation4], 1 }

</bundles_post_ra>
